<compile_context>
chip_gen: v6e
topology: v6e:2x2x1
jax: 0.10.0
libtpu: 0.0.40
codegen_flags: <defaults>
</compile_context>

<pallas_src>
import jax
import jax.numpy as jnp
from jax.experimental import pallas as pl
from jax.experimental.pallas import tpu as pltpu


def _round_up(a, b):
    return (a + b - 1) // b * b


def _make_mlp_kernel(n_layers):
    """Fused pointwise-MLP kernel (row-major blocks) for `n_layers` Linears."""

    def kernel(x_ref, *refs):
        # refs = (w1, b1, w2, b2, ..., wL, bL, out)
        o_ref = refs[-1]
        wb = refs[:-1]
        h = x_ref[...].astype(jnp.float32)                    # (tile_rows, d0)
        for li in range(n_layers):
            w = wb[2 * li][...]                               # (d_in, d_out)  f32 or bf16
            b = wb[2 * li + 1][...].astype(jnp.float32)       # (1, d_out)     f32
            # MXU matmul in the weights' dtype, f32 accumulation, f32 bias.
            h = jnp.dot(h.astype(w.dtype), w,
                        preferred_element_type=jnp.float32) + b
            if li != n_layers - 1:                            # doLastRelu=False
                h = jnp.maximum(h, 0.0)
        o_ref[...] = h.astype(o_ref.dtype)

    return kernel


def _resident_spec(shape):
    """Grid-invariant (weights/bias) BlockSpec; single-buffer large blocks."""
    if max(shape) >= 512:
        return pl.BlockSpec(shape, lambda i: (0, 0), pipeline_mode=pl.Buffered(1))
    return pl.BlockSpec(shape, lambda i: (0, 0))


def folding_net_single(x, weights, biases, *, tile_rows=None, mxu_bf16="auto",
                       vmem_limit_bytes=None):
    """FoldingNetSingle.forward.

    x:       (B, N, d0)             float32
    weights: list of (d_i, d_{i+1}) float32  (math orientation: h @ W)
    biases:  list of (d_{i+1},)     float32
    returns: (B, N, d_last)
    """
    B, N, d0 = x.shape
    n_layers = len(weights)
    d_out = weights[-1].shape[1]
    rows = B * N
    itemsize = jnp.dtype(x.dtype).itemsize

    # ---- tile selection: big tiles amortize per-step overhead, but keep a
    # multi-step grid so the "parallel" axis shards across v7x's two TCs.
    if tile_rows is None:
        tile_rows = max(512, min(8192, pl.next_power_of_2(max(1, rows // 8))))
    tile_rows = int(min(tile_rows, _round_up(rows, 8)))
    grid = (pl.cdiv(rows, tile_rows),)

    # ---- free reshape, no transpose, no pad (Pallas masks the ragged block).
    x2 = x.reshape(rows, d0)

    def _prep_w(w):
        if mxu_bf16 == "auto":
            # Narrow MXU inputs only for production-width layers (v6e/v7x win);
            # tiny FoldingNet layers stay f32.
            return w.astype(jnp.bfloat16) if min(w.shape) >= 256 else w
        return w.astype(jnp.bfloat16) if mxu_bf16 else w

    w_p = [_prep_w(w) for w in weights]
    b_p = [b.reshape(1, -1).astype(jnp.float32) for b in biases]

    in_specs = [pl.BlockSpec((tile_rows, d0), lambda i: (i, 0))]
    for w, b in zip(w_p, b_p):
        in_specs.append(_resident_spec(w.shape))
        in_specs.append(_resident_spec(b.shape))
    out_spec = pl.BlockSpec((tile_rows, d_out), lambda i: (i, 0))

    # ---- VMEM budget (lane/sublane padded), re-derived from actual blocks.
    def _blk_bytes(shape, dtype, nbuf):
        r = _round_up(shape[0], 8)
        c = _round_up(shape[1], 128)
        return r * c * jnp.dtype(dtype).itemsize * nbuf

    if vmem_limit_bytes is None:
        vmem = _blk_bytes((tile_rows, d0), x.dtype, 2)          # input, dbl-buffered
        vmem += _blk_bytes((tile_rows, d_out), x.dtype, 2)      # output, dbl-buffered
        max_width = max(max(w.shape) for w in weights)
        vmem += 2 * _blk_bytes((tile_rows, max_width), jnp.float32, 1)  # intermediates
        for w, b in zip(w_p, b_p):
            nbuf = 1 if max(w.shape) >= 512 else 2
            vmem += _blk_bytes(w.shape, w.dtype, nbuf)
            vmem += _blk_bytes(b.shape, b.dtype, nbuf)
        vmem_limit_bytes = int(min(max(vmem + (4 << 20), 8 << 20), 56 << 20))

    flops = 2 * rows * sum(int(w.shape[0]) * int(w.shape[1]) for w in weights)
    bytes_accessed = (
        rows * (d0 + d_out) * itemsize
        + sum(int(w.size) * jnp.dtype(w.dtype).itemsize for w in w_p)
        + sum(int(b.size) * jnp.dtype(b.dtype).itemsize for b in b_p)
    )

    out = pl.pallas_call(
        _make_mlp_kernel(n_layers),
        out_shape=jax.ShapeDtypeStruct((rows, d_out), x.dtype),
        grid=grid,
        in_specs=in_specs,
        out_specs=out_spec,
        compiler_params=pltpu.CompilerParams(
            dimension_semantics=("parallel",),
            vmem_limit_bytes=vmem_limit_bytes,
        ),
        cost_estimate=pl.CostEstimate(
            flops=flops, transcendentals=0, bytes_accessed=bytes_accessed
        ),
    )(x2, *[a for wb in zip(w_p, b_p) for a in wb])

    return out.reshape(B, N, d_out)   # free reshape


def _reference(x, weights, biases):
    h = x
    n = len(weights)
    for i, (w, b) in enumerate(zip(weights, biases)):
        h = h @ w + b
        if i != n - 1:
            h = jnp.maximum(h, 0.0)
    return h


if __name__ == "__main__":
    # Small FoldingNetSingle config, e.g. dims = (3, 32, 32, 4)
    dims = (3, 32, 32, 4)
    B, N = 2, 1000  # rows = 2000: exercises the ragged (masked) last block

    key = jax.random.PRNGKey(0)
    kx, *kws = jax.random.split(key, 1 + 2 * (len(dims) - 1))

    x = jax.random.normal(kx, (B, N, dims[0]), dtype=jnp.float32)

    weights, biases = [], []
    for i in range(len(dims) - 1):
        kw, kb = kws[2 * i], kws[2 * i + 1]
        w = jax.random.normal(kw, (dims[i], dims[i + 1]), dtype=jnp.float32) * 0.1
        b = jax.random.normal(kb, (dims[i + 1],), dtype=jnp.float32) * 0.1
        weights.append(w)
        biases.append(b)

    out = folding_net_single(x, weights, biases)   # auto tile (multi-step grid)
    out = jax.block_until_ready(out)

    ref = _reference(x, weights, biases)
    assert out.shape == (B, N, dims[-1])
    assert jnp.allclose(out, ref, atol=1e-5, rtol=1e-5), "mismatch vs reference"

    print("KERNEL_OK")
</pallas_src>

<mosaic_0001>
module attributes {stable_mosaic.version = 11 : i64} {
  func.func @kernel(%arg0: i32, %arg1: memref<512x3xf32, #tpu.memory_space<vmem>>, %arg2: memref<3x32xf32, #tpu.memory_space<vmem>>, %arg3: memref<1x32xf32, #tpu.memory_space<vmem>>, %arg4: memref<32x32xf32, #tpu.memory_space<vmem>>, %arg5: memref<1x32xf32, #tpu.memory_space<vmem>>, %arg6: memref<32x4xf32, #tpu.memory_space<vmem>>, %arg7: memref<1x4xf32, #tpu.memory_space<vmem>>, %arg8: memref<512x4xf32, #tpu.memory_space<vmem>>) attributes {dimension_semantics = [#tpu.dimension_semantics<parallel>], iteration_bounds = array<i64: 4>, scalar_prefetch = 0 : i64, scratch_operands = 0 : i64, tpu.core_type = #tpu.core_type<tc>, window_params = [{transform_indices = @transform_0, window_bounds = array<i64: 512, 3>}, {pipeline_mode = #tpu.pipeline_mode<synchronous>, transform_indices = @transform_1, window_bounds = array<i64: 3, 32>}, {pipeline_mode = #tpu.pipeline_mode<synchronous>, transform_indices = @transform_2, window_bounds = array<i64: 1, 32>}, {pipeline_mode = #tpu.pipeline_mode<synchronous>, transform_indices = @transform_3, window_bounds = array<i64: 32, 32>}, {pipeline_mode = #tpu.pipeline_mode<synchronous>, transform_indices = @transform_4, window_bounds = array<i64: 1, 32>}, {pipeline_mode = #tpu.pipeline_mode<synchronous>, transform_indices = @transform_5, window_bounds = array<i64: 32, 4>}, {pipeline_mode = #tpu.pipeline_mode<synchronous>, transform_indices = @transform_6, window_bounds = array<i64: 1, 4>}, {transform_indices = @transform_7, window_bounds = array<i64: 512, 4>}]} {
    %c0 = arith.constant 0 : index
    %c0_0 = arith.constant 0 : index
    %0 = vector.load %arg1[%c0, %c0_0] : memref<512x3xf32, #tpu.memory_space<vmem>>, vector<512x3xf32>
    %c0_1 = arith.constant 0 : index
    %c0_2 = arith.constant 0 : index
    %1 = vector.load %arg2[%c0_1, %c0_2] : memref<3x32xf32, #tpu.memory_space<vmem>>, vector<3x32xf32>
    %c0_3 = arith.constant 0 : index
    %c0_4 = arith.constant 0 : index
    %2 = vector.load %arg3[%c0_3, %c0_4] : memref<1x32xf32, #tpu.memory_space<vmem>>, vector<1x32xf32>
    %cst = arith.constant dense<0.000000e+00> : vector<512x32xf32>
    %3 = tpu.matmul %0, %1, %cst {dimension_numbers = #tpu.dot_dimension_numbers<[1], [0], [0], [1], [0, 0, 1, 1], [], []>} : vector<512x3xf32>, vector<3x32xf32>, vector<512x32xf32> -> vector<512x32xf32>
    %4 = vector.broadcast %2 : vector<1x32xf32> to vector<512x32xf32>
    %5 = arith.addf %3, %4 : vector<512x32xf32>
    %cst_5 = arith.constant 0.000000e+00 : f32
    %6 = vector.broadcast %cst_5 : f32 to vector<512x32xf32>
    %7 = arith.maximumf %5, %6 : vector<512x32xf32>
    %c0_6 = arith.constant 0 : index
    %c0_7 = arith.constant 0 : index
    %8 = vector.load %arg4[%c0_6, %c0_7] : memref<32x32xf32, #tpu.memory_space<vmem>>, vector<32x32xf32>
    %c0_8 = arith.constant 0 : index
    %c0_9 = arith.constant 0 : index
    %9 = vector.load %arg5[%c0_8, %c0_9] : memref<1x32xf32, #tpu.memory_space<vmem>>, vector<1x32xf32>
    %cst_10 = arith.constant dense<0.000000e+00> : vector<512x32xf32>
    %10 = tpu.matmul %7, %8, %cst_10 {dimension_numbers = #tpu.dot_dimension_numbers<[1], [0], [0], [1], [0, 0, 1, 1], [], []>} : vector<512x32xf32>, vector<32x32xf32>, vector<512x32xf32> -> vector<512x32xf32>
    %11 = vector.broadcast %9 : vector<1x32xf32> to vector<512x32xf32>
    %12 = arith.addf %10, %11 : vector<512x32xf32>
    %cst_11 = arith.constant 0.000000e+00 : f32
    %13 = vector.broadcast %cst_11 : f32 to vector<512x32xf32>
    %14 = arith.maximumf %12, %13 : vector<512x32xf32>
    %c0_12 = arith.constant 0 : index
    %c0_13 = arith.constant 0 : index
    %15 = vector.load %arg6[%c0_12, %c0_13] : memref<32x4xf32, #tpu.memory_space<vmem>>, vector<32x4xf32>
    %c0_14 = arith.constant 0 : index
    %c0_15 = arith.constant 0 : index
    %16 = vector.load %arg7[%c0_14, %c0_15] : memref<1x4xf32, #tpu.memory_space<vmem>>, vector<1x4xf32>
    %cst_16 = arith.constant dense<0.000000e+00> : vector<512x4xf32>
    %17 = tpu.matmul %14, %15, %cst_16 {dimension_numbers = #tpu.dot_dimension_numbers<[1], [0], [0], [1], [0, 0, 1, 1], [], []>} : vector<512x32xf32>, vector<32x4xf32>, vector<512x4xf32> -> vector<512x4xf32>
    %18 = vector.broadcast %16 : vector<1x4xf32> to vector<512x4xf32>
    %19 = arith.addf %17, %18 : vector<512x4xf32>
    %c0_17 = arith.constant 0 : index
    %c0_18 = arith.constant 0 : index
    %20 = vector.load %arg8[%c0_17, %c0_18] : memref<512x4xf32, #tpu.memory_space<vmem>>, vector<512x4xf32>
    tpu.vector_store %arg8[%c0_17, %c0_18], %19 {strides = array<i32>} : memref<512x4xf32, #tpu.memory_space<vmem>>, vector<512x4xf32>,
    return
  }
  func.func @transform_0(%arg0: i32) -> (i32, i32) {
    %c0_i32 = arith.constant 0 : i32
    %c0_i32_0 = arith.constant 0 : i32
    return %arg0, %c0_i32 : i32, i32
  }
  func.func @transform_1(%arg0: i32) -> (i32, i32) {
    %c0_i32 = arith.constant 0 : i32
    %c0_i32_0 = arith.constant 0 : i32
    %c0_i32_1 = arith.constant 0 : i32
    return %c0_i32, %c0_i32_0 : i32, i32
  }
  func.func @transform_2(%arg0: i32) -> (i32, i32) {
    %c0_i32 = arith.constant 0 : i32
    %c0_i32_0 = arith.constant 0 : i32
    %c0_i32_1 = arith.constant 0 : i32
    return %c0_i32, %c0_i32_0 : i32, i32
  }
  func.func @transform_3(%arg0: i32) -> (i32, i32) {
    %c0_i32 = arith.constant 0 : i32
    %c0_i32_0 = arith.constant 0 : i32
    %c0_i32_1 = arith.constant 0 : i32
    return %c0_i32, %c0_i32_0 : i32, i32
  }
  func.func @transform_4(%arg0: i32) -> (i32, i32) {
    %c0_i32 = arith.constant 0 : i32
    %c0_i32_0 = arith.constant 0 : i32
    %c0_i32_1 = arith.constant 0 : i32
    return %c0_i32, %c0_i32_0 : i32, i32
  }
  func.func @transform_5(%arg0: i32) -> (i32, i32) {
    %c0_i32 = arith.constant 0 : i32
    %c0_i32_0 = arith.constant 0 : i32
    %c0_i32_1 = arith.constant 0 : i32
    return %c0_i32, %c0_i32_0 : i32, i32
  }
  func.func @transform_6(%arg0: i32) -> (i32, i32) {
    %c0_i32 = arith.constant 0 : i32
    %c0_i32_0 = arith.constant 0 : i32
    %c0_i32_1 = arith.constant 0 : i32
    return %c0_i32, %c0_i32_0 : i32, i32
  }
  func.func @transform_7(%arg0: i32) -> (i32, i32) {
    %c0_i32 = arith.constant 0 : i32
    %c0_i32_0 = arith.constant 0 : i32
    return %arg0, %c0_i32 : i32, i32
  }
}

</mosaic_0001>

<bundles_post_ra>
// kernel: tpu_custom_call.1
= control target key start
LH: loop header
LB: loop body
LE: loop exit
PB: predicated region body
PF: predicated region fallthrough
CT: control target
= control target key end

     0   :  { %s3740_s24 = smov 0   ;;  %s3742_s25 = smov 0   ;;  %s4660_s0 = inlined_call_operand.vmem [shape: f32[2000,3], index: 0, kind: input, shape index: {}]   ;;  %s4661_s1 = inlined_call_operand.vmem [shape: f32[3,32], index: 1, kind: input, shape index: {}]   ;;  %s4662_s2 = inlined_call_operand.vmem [shape: f32[1,32], index: 2, kind: input, shape index: {}]   ;;  %s4663_s3 = inlined_call_operand.vmem [shape: f32[32,32], index: 3, kind: input, shape index: {}]   ;;  %s4664_s4 = inlined_call_operand.vmem [shape: f32[1,32], index: 4, kind: input, shape index: {}]   ;;  %s4665_s5 = inlined_call_operand.vmem [shape: f32[32,4], index: 5, kind: input, shape index: {}]   ;;  %s4666_s6 = inlined_call_operand.vmem [shape: f32[1,4], index: 6, kind: input, shape index: {}]   ;;  %s4667_s7 = inlined_call_operand.vmem [shape: f32[2000,4], index: 7, kind: output, shape index: {}]  }
   0x1   :  { %s3744_s26 = smov 0  }
   0x2 LB: > { %s3753_s27 = sadd.s32 4294967295, %s3666_s26   ;;  %s3755_s28 = sadd.s32 1, %s3666_s26   ;;  %s3666_s26 = sphi %s3744_s26, %s4676_s26   ;;  %s3662_s25 = sphi %s3742_s25, %s4675_s25   ;;  %s3658_s24 = sphi %s3740_s24, %s4674_s24  }
   0x3   : > { %s173_s29 = ssub.s32 %s3666_s26, %s3755_s28  ;;  %s176_s30 = sadd.s32 1, %s3662_s25 }
   0x4   : > { %p174_p0 = scmp.eq.s32.totalorder %s173_s29, 0  ;;  %p186_p1 = scmp.ne.s32.totalorder %s3662_s25, %s3658_s24 }
   0x5   : > { %p187_p2 = scmp.eq.s32.totalorder %s3753_s27, 3  ;;  %p2795_p3 = scmp.ge.s32.totalorder %s3666_s26, 1 }
   0x6   : > { %s3763_s8 = scalar_select %p174_p0, %s3662_s25, %s176_s30  }
   0x7   : > { %p3765_p4 = por %p187_p2, %p186_p1  ;;  %p246_p5 = scmp.lt.s32.totalorder %s3666_s26, 5 }
   0x9   : > { %p247_p6 = pnand %p2795_p3, %p246_p5 }
   0xa   : > { %s3773_s12 = sshll.u32 (!%p247_p6), %s3753_s27, 6  ;;  %s278_s22 = sand.u32 (!%p247_p6), 1, %s3658_s24  }
   0xb   : > { %250 = sbr.rel (%p247_p6) target bundleno = 808 (0x328), region = 48  ;;  %p286_p7 = scmp.lt.s32.totalorder (!%p247_p6), %s3773_s12, 249 }
   0xc   : > { %s2796_s23 = sshll.u32 (!%p247_p6), %s278_s22, 9 }
   0xd   : > { %s4261_s30 = scalar_lea.vmem (!%p247_p6), [#allocation2], %s2796_s23  }
  0x10   : > { %v364_v0 = vld [vmem:[%s4661_s1] sm:$0x7]  ;;  %vm565_vm0 = vcmask 1042432   ;;  %v1021_v1 = vld [vmem:[%s4663_s3 + $0x18] sm:$0xff]  ;;  %s287_s15 = scalar_select %p286_p7, %s3773_s12, 249  ;;  %vm372_vm1 = vcmask 23552  }
  0x11   : > { %3216 = vmatprep.subr.msk.mxu0 %vm565_vm0, %v364_v0  ;;  %3522 = vmatprep.subr.msk.mxu1 %vm565_vm0, %v364_v0  ;;  %v1020_v10 = vld [vmem:[%s4663_s3 + $0x10] sm:$0xff]  ;;  %v1019_v16 = vld [vmem:[%s4663_s3 + $0x8] sm:$0xff]  ;;  %v1018_v19 = vld [vmem:[%s4663_s3] sm:$0xff]  ;;  %vm1029_vm2 = vcmask 261120   ;;  %vm2259_vm3 = vcmask 31744   ;;  %s2332_s24 = ssub.s32 (%p3765_p4), 250, %s3773_s12 }
  0x12   : > { %3217 = vmatpush3.msk.msra.mxu0 %vm565_vm0, %v364_v0  ;;  %3523 = vmatpush3.msk.msra.mxu1 %vm565_vm0, %v364_v0  ;;  %s2798_s16 = sshll.u32 %s287_s15, 3  ;;  %s3012_s10 = sshll.u32 (%p3765_p4), %s3753_s27, 9 }
  0x13   : > { %3314 = vmatprep.subr.mxu1 %v1021_v1  ;;  %s3783_s19 = scalar_lea.vmem %s4660_s0, %s2798_s16  ;;  %p2333_p8 = scmp.lt.s32.totalorder (%p3765_p4), %s2332_s24, 64 }
  0x14   : > { %v300_v2 = vld [vmem:[%s3783_s19] sm:$0xff]  ;;  %v301_v3 = vld [vmem:[%s3783_s19 + $0x8] sm:$0xff]  ;;  %v302_v4 = vld [vmem:[%s3783_s19 + $0x10] sm:$0xff]  ;;  %s4461_s14 = scalar_lea.vmem (%p3765_p4), %s4667_s7, %s3012_s10  }
  0x15   : > { %3218 = vmatprep.mubr.msk.f32.mxu0 %vm372_vm1, %v300_v2  ;;  %v303_v5 = vld [vmem:[%s3783_s19 + $0x18] sm:$0xff]  ;;  %v304_v6 = vld [vmem:[%s3783_s19 + $0x20] sm:$0xff]  ;;  %v305_v7 = vld [vmem:[%s3783_s19 + $0x28] sm:$0xff] }
  0x16   : > { %3219 = vmatmul.mubr.msk.f32.vlgmr.msra.gmra.mxu0 %vm372_vm1, %v301_v3  ;;  %v306_v8 = vld [vmem:[%s3783_s19 + $0x30] sm:$0xff]  ;;  %v332_v9 = vld [vmem:[%s3783_s19 + $0x100] sm:$0xff]  ;;  %v307_v11 = vld [vmem:[%s3783_s19 + $0x38] sm:$0xff] }
  0x17   : > { %3221 = vmatprep.mubr.msk.f32.mxu0 %vm372_vm1, %v302_v4  ;;  %3266 = vmatprep.mubr.msk.f32.mxu1 %vm372_vm1, %v332_v9  ;;  %v333_v12 = vld [vmem:[%s3783_s19 + $0x108] sm:$0xff]  ;;  %v334_v13 = vld [vmem:[%s3783_s19 + $0x110] sm:$0xff]  ;;  %v308_v14 = vld [vmem:[%s3783_s19 + $0x40] sm:$0xff] }
  0x18   : > { %3267 = vmatmul.mubr.msk.f32.vlgmr.msra.gmra.mxu1 %vm372_vm1, %v333_v12  ;;  %v335_v15 = vld [vmem:[%s3783_s19 + $0x118] sm:$0xff]  ;;  %v336_v17 = vld [vmem:[%s3783_s19 + $0x120] sm:$0xff]  ;;  %v309_v18 = vld [vmem:[%s3783_s19 + $0x48] sm:$0xff] }
  0x19   : > { %3269 = vmatprep.mubr.msk.f32.mxu1 %vm372_vm1, %v334_v13  ;;  %3315 = vmatpush3.msra.mxu1 %v1021_v1  ;;  %v310_v20 = vld [vmem:[%s3783_s19 + $0x50] sm:$0xff]  ;;  %v337_v21 = vld [vmem:[%s3783_s19 + $0x128] sm:$0xff]  ;;  %v311_v23 = vld [vmem:[%s3783_s19 + $0x58] sm:$0xff] }
  0x1a   : > { %3222 = vmatmul.mubr.msk.f32.gmra.mxu0 %vm372_vm1, %v303_v5  ;;  %3316 = vmatprep.subr.mxu1 %v1020_v10  ;;  %v338_v22 = vld [vmem:[%s3783_s19 + $0x130] sm:$0xff]  ;;  %v312_v24 = vld [vmem:[%s3783_s19 + $0x60] sm:$0xff]  ;;  %v339_v25 = vld [vmem:[%s3783_s19 + $0x138] sm:$0xff] }
  0x1b   : > { %3224 = vmatprep.mubr.msk.f32.mxu0 %vm372_vm1, %v304_v6  ;;  %3317 = vmatpush3.msra.mxu1 %v1020_v10  ;;  %v340_v26 = vld [vmem:[%s3783_s19 + $0x140] sm:$0xff]  ;;  %v313_v27 = vld [vmem:[%s3783_s19 + $0x68] sm:$0xff]  ;;  %v314_v28 = vld [vmem:[%s3783_s19 + $0x70] sm:$0xff] }
  0x1c   : > { %3270 = vmatmul.mubr.msk.f32.gmra.mxu1 %vm372_vm1, %v335_v15  ;;  %3318 = vmatprep.subr.mxu1 %v1019_v16  ;;  %v341_v29 = vld [vmem:[%s3783_s19 + $0x148] sm:$0xff]  ;;  %v342_v30 = vld [vmem:[%s3783_s19 + $0x150] sm:$0xff]  ;;  %v315_v31 = vld [vmem:[%s3783_s19 + $0x78] sm:$0xff] }
  0x1d   : > { %3272 = vmatprep.mubr.msk.f32.mxu1 %vm372_vm1, %v336_v17  ;;  %3319 = vmatpush3.msra.mxu1 %v1019_v16  ;;  %v316_v32 = vld [vmem:[%s3783_s19 + $0x80] sm:$0xff]  ;;  %v343_v33 = vld [vmem:[%s3783_s19 + $0x158] sm:$0xff]  ;;  %v317_v35 = vld [vmem:[%s3783_s19 + $0x88] sm:$0xff] }
  0x1e   : > { %3225 = vmatmul.mubr.msk.f32.gmra.mxu0 %vm372_vm1, %v305_v7  ;;  %3320 = vmatprep.subr.mxu1 %v1018_v19  ;;  %v344_v34 = vld [vmem:[%s3783_s19 + $0x160] sm:$0xff]  ;;  %v318_v36 = vld [vmem:[%s3783_s19 + $0x90] sm:$0xff]  ;;  %v345_v37 = vld [vmem:[%s3783_s19 + $0x168] sm:$0xff] }
  0x1f   : > { %3227 = vmatprep.mubr.msk.f32.mxu0 %vm372_vm1, %v306_v8  ;;  %3321 = vmatpush3.msra.mxu1 %v1018_v19  ;;  %v346_v38 = vld [vmem:[%s3783_s19 + $0x170] sm:$0xff]  ;;  %v319_v39 = vld [vmem:[%s3783_s19 + $0x98] sm:$0xff]  ;;  %v320_v40 = vld [vmem:[%s3783_s19 + $0xa0] sm:$0xff] }
  0x20   : > { %3273 = vmatmul.mubr.msk.f32.gmra.mxu1 %vm372_vm1, %v337_v21  ;;  %v347_v41 = vld [vmem:[%s3783_s19 + $0x178] sm:$0xff]  ;;  %v348_v42 = vld [vmem:[%s3783_s19 + $0x180] sm:$0xff]  ;;  %v321_v43 = vld [vmem:[%s3783_s19 + $0xa8] sm:$0xff] }
  0x21   : > { %3275 = vmatprep.mubr.msk.f32.mxu1 %vm372_vm1, %v338_v22  ;;  %v322_v44 = vld [vmem:[%s3783_s19 + $0xb0] sm:$0xff]  ;;  %v349_v45 = vld [vmem:[%s3783_s19 + $0x188] sm:$0xff]  ;;  %v323_v47 = vld [vmem:[%s3783_s19 + $0xb8] sm:$0xff] }
  0x22   : > { %3228 = vmatmul.mubr.msk.f32.gmra.mxu0 %vm372_vm1, %v307_v11  ;;  %v350_v46 = vld [vmem:[%s3783_s19 + $0x190] sm:$0xff]  ;;  %v324_v48 = vld [vmem:[%s3783_s19 + $0xc0] sm:$0xff]  ;;  %v351_v49 = vld [vmem:[%s3783_s19 + $0x198] sm:$0xff] }
  0x23   : > { %3230 = vmatprep.mubr.msk.f32.mxu0 %vm372_vm1, %v308_v14  ;;  %v352_v50 = vld [vmem:[%s3783_s19 + $0x1a0] sm:$0xff]  ;;  %v325_v51 = vld [vmem:[%s3783_s19 + $0xc8] sm:$0xff]  ;;  %v326_v52 = vld [vmem:[%s3783_s19 + $0xd0] sm:$0xff] }
  0x24   : > { %3276 = vmatmul.mubr.msk.f32.gmra.mxu1 %vm372_vm1, %v339_v25  ;;  %v353_v53 = vld [vmem:[%s3783_s19 + $0x1a8] sm:$0xff]  ;;  %v354_v54 = vld [vmem:[%s3783_s19 + $0x1b0] sm:$0xff]  ;;  %v327_v55 = vld [vmem:[%s3783_s19 + $0xd8] sm:$0xff] }
  0x25   : > { %3278 = vmatprep.mubr.msk.f32.mxu1 %vm372_vm1, %v340_v26  ;;  %v328_v56 = vld [vmem:[%s3783_s19 + $0xe0] sm:$0xff]  ;;  %v355_v57 = vld [vmem:[%s3783_s19 + $0x1b8] sm:$0xff]  ;;  %v329_v59 = vld [vmem:[%s3783_s19 + $0xe8] sm:$0xff] }
  0x26   : > { %3231 = vmatmul.mubr.msk.f32.gmra.mxu0 %vm372_vm1, %v309_v18  ;;  %v356_v58 = vld [vmem:[%s3783_s19 + $0x1c0] sm:$0xff]  ;;  %v330_v60 = vld [vmem:[%s3783_s19 + $0xf0] sm:$0xff]  ;;  %v357_v61 = vld [vmem:[%s3783_s19 + $0x1c8] sm:$0xff] }
  0x27   : > { %3233 = vmatprep.mubr.msk.f32.mxu0 %vm372_vm1, %v310_v20  ;;  %v358_v62 = vld [vmem:[%s3783_s19 + $0x1d0] sm:$0xff]  ;;  %v331_v63 = vld [vmem:[%s3783_s19 + $0xf8] sm:$0xff]  ;;  %v360_v1 = vld [vmem:[%s3783_s19 + $0x1e0] sm:$0xff] }
  0x28   : > { %3279 = vmatmul.mubr.msk.f32.gmra.mxu1 %vm372_vm1, %v341_v29  ;;  %v359_v0 = vld [vmem:[%s3783_s19 + $0x1d8] sm:$0xff]  ;;  %v361_v2 = vld [vmem:[%s3783_s19 + $0x1e8] sm:$0xff]  ;;  %v362_v3 = vld [vmem:[%s3783_s19 + $0x1f0] sm:$0xff] }
  0x29   : > { %3281 = vmatprep.mubr.msk.f32.mxu1 %vm372_vm1, %v342_v30  ;;  %v363_v4 = vld [vmem:[%s3783_s19 + $0x1f8] sm:$0xff]  ;;  %v3925_v5 = vld [vmem:[%s4662_s2] ss:$0 sm:$0xff]  ;;  %v1673_v12 = vld [vmem:[%s4665_s5 + $0x10] sm:$0xff] }
  0x2a   : > { %3234 = vmatmul.mubr.msk.f32.gmra.mxu0 %vm372_vm1, %v311_v23  ;;  %v1674_v11 = vld [vmem:[%s4665_s5 + $0x18] sm:$0xff]  ;;  %v1672_v17 = vld [vmem:[%s4665_s5 + $0x8] sm:$0xff]  ;;  %v1671_v20 = vld [vmem:[%s4665_s5] sm:$0xff] }
  0x2b   : > { %3236 = vmatprep.mubr.msk.f32.mxu0 %vm372_vm1, %v312_v24  ;;  %3418 = vmatprep.subr.mxu0 %v1674_v11 }
  0x2c   : > { %3282 = vmatmul.mubr.msk.f32.gmra.mxu1 %vm372_vm1, %v343_v33  ;;  %3419 = vmatpush3.msra.mxu0 %v1674_v11 }
  0x2d   : > { %3284 = vmatprep.mubr.msk.f32.mxu1 %vm372_vm1, %v344_v34  ;;  %3420 = vmatprep.subr.mxu0 %v1673_v12 }
  0x2e   : > { %3237 = vmatmul.mubr.msk.f32.gmra.mxu0 %vm372_vm1, %v313_v27 }
  0x2f   : > { %3239 = vmatprep.mubr.msk.f32.mxu0 %vm372_vm1, %v314_v28  ;;  %3421 = vmatpush3.msra.mxu0 %v1673_v12 }
  0x30   : > { %3285 = vmatmul.mubr.msk.f32.gmra.mxu1 %vm372_vm1, %v345_v37  ;;  %3422 = vmatprep.subr.mxu0 %v1672_v17 }
  0x31   : > { %3287 = vmatprep.mubr.msk.f32.mxu1 %vm372_vm1, %v346_v38  ;;  %3423 = vmatpush3.msra.mxu0 %v1672_v17 }
  0x32   : > { %3240 = vmatmul.mubr.msk.f32.gmra.mxu0 %vm372_vm1, %v315_v31  ;;  %3424 = vmatprep.subr.mxu0 %v1671_v20 }
  0x33   : > { %3242 = vmatprep.mubr.msk.f32.mxu0 %vm372_vm1, %v316_v32  ;;  %3425 = vmatpush3.msra.mxu0 %v1671_v20 }
  0x34   : > { %3288 = vmatmul.mubr.msk.f32.gmra.mxu1 %vm372_vm1, %v347_v41 }
  0x35   : > { %3290 = vmatprep.mubr.msk.f32.mxu1 %vm372_vm1, %v348_v42 }
  0x36   : > { %3243 = vmatmul.mubr.msk.f32.gmra.mxu0 %vm372_vm1, %v317_v35 }
  0x37   : > { %3245 = vmatprep.mubr.msk.f32.mxu0 %vm372_vm1, %v318_v36 }
  0x38   : > { %3291 = vmatmul.mubr.msk.f32.gmra.mxu1 %vm372_vm1, %v349_v45 }
  0x39   : > { %3293 = vmatprep.mubr.msk.f32.mxu1 %vm372_vm1, %v350_v46 }
  0x3a   : > { %3246 = vmatmul.mubr.msk.f32.gmra.mxu0 %vm372_vm1, %v319_v39 }
  0x3b   : > { %3248 = vmatprep.mubr.msk.f32.mxu0 %vm372_vm1, %v320_v40 }
  0x3c   : > { %3294 = vmatmul.mubr.msk.f32.gmra.mxu1 %vm372_vm1, %v351_v49 }
  0x3d   : > { %3296 = vmatprep.mubr.msk.f32.mxu1 %vm372_vm1, %v352_v50 }
  0x3e   : > { %3249 = vmatmul.mubr.msk.f32.gmra.mxu0 %vm372_vm1, %v321_v43 }
  0x3f   : > { %3251 = vmatprep.mubr.msk.f32.mxu0 %vm372_vm1, %v322_v44 }
  0x40   : > { %3297 = vmatmul.mubr.msk.f32.gmra.mxu1 %vm372_vm1, %v353_v53 }
  0x41   : > { %3299 = vmatprep.mubr.msk.f32.mxu1 %vm372_vm1, %v354_v54 }
  0x42   : > { %3252 = vmatmul.mubr.msk.f32.gmra.mxu0 %vm372_vm1, %v323_v47 }
  0x43   : > { %3254 = vmatprep.mubr.msk.f32.mxu0 %vm372_vm1, %v324_v48 }
  0x44   : > { %3300 = vmatmul.mubr.msk.f32.gmra.mxu1 %vm372_vm1, %v355_v57 }
  0x45   : > { %3302 = vmatprep.mubr.msk.f32.mxu1 %vm372_vm1, %v356_v58 }
  0x46   : > { %3255 = vmatmul.mubr.msk.f32.gmra.mxu0 %vm372_vm1, %v325_v51 }
  0x47   : > { %3257 = vmatprep.mubr.msk.f32.mxu0 %vm372_vm1, %v326_v52 }
  0x48   : > { %3303 = vmatmul.mubr.msk.f32.gmra.mxu1 %vm372_vm1, %v357_v61 }
  0x49   : > { %3305 = vmatprep.mubr.msk.f32.mxu1 %vm372_vm1, %v358_v62 }
  0x4a   : > { %3258 = vmatmul.mubr.msk.f32.gmra.mxu0 %vm372_vm1, %v327_v55 }
  0x4b   : > { %3260 = vmatprep.mubr.msk.f32.mxu0 %vm372_vm1, %v328_v56 }
  0x4c   : > { %3306 = vmatmul.mubr.msk.f32.gmra.mxu1 %vm372_vm1, %v359_v0 }
  0x4d   : > { %3308 = vmatprep.mubr.msk.f32.mxu1 %vm372_vm1, %v360_v1 }
  0x4e   : > { %3261 = vmatmul.mubr.msk.f32.gmra.mxu0 %vm372_vm1, %v329_v59 }
  0x4f   : > { %3263 = vmatprep.mubr.msk.f32.mxu0 %vm372_vm1, %v330_v60 }
  0x50   : > { %3309 = vmatmul.mubr.msk.f32.gmra.mxu1 %vm372_vm1, %v361_v2 }
  0x51   : > { %3311 = vmatprep.mubr.msk.f32.mxu1 %vm372_vm1, %v362_v3 }
  0x52   : > { %3264 = vmatmul.mubr.msk.f32.gmra.mxu0 %vm372_vm1, %v331_v63 }
  0x54   : > { %3312 = vmatmul.mubr.msk.f32.gmra.mxu1 %vm372_vm1, %v363_v4 }
  0xd6   : > { %v3220_v6 = vpop.f32.mrf.mxu0 }
  0xd7   : > { %v641_v7 = vadd.f32 %v3220_v6, %v3925_v5 }
  0xd8   : > { %v635_v8 = vpop.f32.mrf.mxu0  ;;  %v3946_v25 = vpop.f32.mrf.mxu1 }
  0xd9   : > { %v636_v9 = vadd.f32 %v3925_v5, %v635_v8  ;;  %v955_v14 = vmax.f32 %v641_v7, 0.0 }
  0xda   : > { %v3223_v10 = vpop.f32.mrf.mxu0  ;;  %v3951_v28 = vpop.f32.mrf.mxu1 }
  0xdb   : > { %v954_v13 = vmax.f32 %v636_v9, 0.0  ;;  %v651_v15 = vadd.f32 %v3223_v10, %v3925_v5 }
  0xdc   : > { %v645_v16 = vpop.f32.mrf.mxu0  ;;  %v3954_v33 = vpop.f32.mrf.mxu1 }
  0xdd   : > { %v646_v18 = vadd.f32 %v3925_v5, %v645_v16  ;;  %3322 = vmatprep.mubr.msk.f32.mxu1 %vm1029_vm2, %v954_v13  ;;  %v957_v22 = vmax.f32 %v651_v15, 0.0 }
  0xde   : > { %v3226_v19 = vpop.f32.mrf.mxu0  ;;  %3323 = vmatmul.mubr.msk.f32.vlgmr.msra.gmra.mxu1 %vm1029_vm2, %v955_v14  ;;  %v3959_v36 = vpop.f32.mrf.mxu1 }
  0xdf   : > { %v956_v21 = vmax.f32 %v646_v18, 0.0  ;;  %v661_v23 = vadd.f32 %v3226_v19, %v3925_v5 }
  0xe0   : > { %v655_v24 = vpop.f32.mrf.mxu0  ;;  %v3962_v41 = vpop.f32.mrf.mxu1 }
  0xe1   : > { %v656_v26 = vadd.f32 %v3925_v5, %v655_v24  ;;  %3325 = vmatprep.mubr.msk.f32.mxu1 %vm1029_vm2, %v956_v21  ;;  %v959_v30 = vmax.f32 %v661_v23, 0.0 }
  0xe2   : > { %v3229_v27 = vpop.f32.mrf.mxu0  ;;  %3326 = vmatmul.mubr.msk.f32.gmra.mxu1 %vm1029_vm2, %v957_v22  ;;  %v3967_v44 = vpop.f32.mrf.mxu1 }
  0xe3   : > { %v958_v29 = vmax.f32 %v656_v26, 0.0  ;;  %v671_v31 = vadd.f32 %v3229_v27, %v3925_v5 }
  0xe4   : > { %v665_v32 = vpop.f32.mrf.mxu0  ;;  %v3970_v49 = vpop.f32.mrf.mxu1 }
  0xe5   : > { %v666_v34 = vadd.f32 %v3925_v5, %v665_v32  ;;  %3328 = vmatprep.mubr.msk.f32.mxu1 %vm1029_vm2, %v958_v29  ;;  %v961_v38 = vmax.f32 %v671_v31, 0.0 }
  0xe6   : > { %v3232_v35 = vpop.f32.mrf.mxu0  ;;  %3329 = vmatmul.mubr.msk.f32.gmra.mxu1 %vm1029_vm2, %v959_v30  ;;  %v3975_v52 = vpop.f32.mrf.mxu1 }
  0xe7   : > { %v960_v37 = vmax.f32 %v666_v34, 0.0  ;;  %v681_v39 = vadd.f32 %v3232_v35, %v3925_v5 }
  0xe8   : > { %v675_v40 = vpop.f32.mrf.mxu0  ;;  %v3978_v57 = vpop.f32.mrf.mxu1 }
  0xe9   : > { %v676_v42 = vadd.f32 %v3925_v5, %v675_v40  ;;  %3331 = vmatprep.mubr.msk.f32.mxu1 %vm1029_vm2, %v960_v37  ;;  %v963_v46 = vmax.f32 %v681_v39, 0.0 }
  0xea   : > { %v3235_v43 = vpop.f32.mrf.mxu0  ;;  %3332 = vmatmul.mubr.msk.f32.gmra.mxu1 %vm1029_vm2, %v961_v38  ;;  %v3984_v0 = vpop.f32.mrf.mxu1 }
  0xeb   : > { %v962_v45 = vmax.f32 %v676_v42, 0.0  ;;  %v691_v47 = vadd.f32 %v3235_v43, %v3925_v5 }
  0xec   : > { %v685_v48 = vpop.f32.mrf.mxu0  ;;  %v3990_v8 = vpop.f32.mrf.mxu1 }
  0xed   : > { %v686_v50 = vadd.f32 %v3925_v5, %v685_v48  ;;  %3334 = vmatprep.mubr.msk.f32.mxu1 %vm1029_vm2, %v962_v45  ;;  %v965_v54 = vmax.f32 %v691_v47, 0.0 }
  0xee   : > { %v3238_v51 = vpop.f32.mrf.mxu0  ;;  %3335 = vmatmul.mubr.msk.f32.gmra.mxu1 %vm1029_vm2, %v963_v46  ;;  %v3996_v15 = vpop.f32.mrf.mxu1 }
  0xef   : > { %v964_v53 = vmax.f32 %v686_v50, 0.0  ;;  %v701_v55 = vadd.f32 %v3238_v51, %v3925_v5 }
  0xf0   : > { %v695_v56 = vpop.f32.mrf.mxu0  ;;  %v4002_v22 = vpop.f32.mrf.mxu1 }
  0xf1   : > { %v696_v58 = vadd.f32 %v3925_v5, %v695_v56  ;;  %3337 = vmatprep.mubr.msk.f32.mxu1 %vm1029_vm2, %v964_v53  ;;  %v967_v61 = vmax.f32 %v701_v55, 0.0 }
  0xf2   : > { %v3241_v59 = vpop.f32.mrf.mxu0  ;;  %3338 = vmatmul.mubr.msk.f32.gmra.mxu1 %vm1029_vm2, %v965_v54  ;;  %v4008_v31 = vpop.f32.mrf.mxu1 }
  0xf3   : > { %v966_v60 = vmax.f32 %v696_v58, 0.0  ;;  %v711_v62 = vadd.f32 %v3241_v59, %v3925_v5 }
  0xf4   : > { %v705_v63 = vpop.f32.mrf.mxu0  ;;  %v4014_v40 = vpop.f32.mrf.mxu1 }
  0xf5   : > { %v706_v1 = vadd.f32 %v3925_v5, %v705_v63  ;;  %3340 = vmatprep.mubr.msk.f32.mxu1 %vm1029_vm2, %v966_v60  ;;  %v969_v4 = vmax.f32 %v711_v62, 0.0  ;;  %v796_v63 = vadd.f32 %v3925_v5, %v3951_v28  ;;  %v801_v28 = vadd.f32 %v3946_v25, %v3925_v5 }
  0xf6   : > { %v3244_v2 = vpop.f32.mrf.mxu0  ;;  %3341 = vmatmul.mubr.msk.f32.gmra.mxu1 %vm1029_vm2, %v967_v61  ;;  %v4020_v50 = vpop.f32.mrf.mxu1 }
  0xf7   : > { %v968_v3 = vmax.f32 %v706_v1, 0.0  ;;  %v721_v6 = vadd.f32 %v3244_v2, %v3925_v5 }
  0xf8   : > { %v715_v7 = vpop.f32.mrf.mxu0  ;;  %v4026_v59 = vpop.f32.mrf.mxu1 }
  0xf9   : > { %v716_v9 = vadd.f32 %v3925_v5, %v715_v7  ;;  %3343 = vmatprep.mubr.msk.f32.mxu1 %vm1029_vm2, %v968_v3  ;;  %v971_v12 = vmax.f32 %v721_v6, 0.0 }
  0xfa   : > { %v3247_v10 = vpop.f32.mrf.mxu0  ;;  %3344 = vmatmul.mubr.msk.f32.gmra.mxu1 %vm1029_vm2, %v969_v4  ;;  %v875_v4 = vpop.f32.mrf.mxu1 }
  0xfb   : > { %v970_v11 = vmax.f32 %v716_v9, 0.0  ;;  %v731_v13 = vadd.f32 %v3247_v10, %v3925_v5  ;;  %v986_v9 = vmax.f32 %v796_v63, 0.0  ;;  %v806_v10 = vadd.f32 %v3925_v5, %v3959_v36 }
  0xfc   : > { %v725_v14 = vpop.f32.mrf.mxu0  ;;  %v811_v36 = vadd.f32 %v3954_v33, %v3925_v5  ;;  %v836_v33 = vadd.f32 %v3925_v5, %v3984_v0 }
  0xfd   : > { %v726_v16 = vadd.f32 %v3925_v5, %v725_v14  ;;  %3346 = vmatprep.mubr.msk.f32.mxu1 %vm1029_vm2, %v970_v11  ;;  %v973_v19 = vmax.f32 %v731_v13, 0.0  ;;  %v988_v13 = vmax.f32 %v806_v10, 0.0  ;;  %v816_v14 = vadd.f32 %v3925_v5, %v3967_v44 }
  0xfe   : > { %v3250_v17 = vpop.f32.mrf.mxu0  ;;  %3347 = vmatmul.mubr.msk.f32.gmra.mxu1 %vm1029_vm2, %v971_v12  ;;  %v4041_v12 = vpop.f32.mrf.mxu1 }
  0xff   : > { %v972_v18 = vmax.f32 %v726_v16, 0.0  ;;  %v741_v20 = vadd.f32 %v3250_v17, %v3925_v5  ;;  %v987_v16 = vmax.f32 %v801_v28, 0.0  ;;  %v990_v25 = vmax.f32 %v816_v14, 0.0 }
 0x100   : > { %v735_v21 = vpop.f32.mrf.mxu0  ;;  %v885_v17 = vpop.f32.mrf.mxu1 }
 0x101   : > { %v736_v23 = vadd.f32 %v3925_v5, %v735_v21  ;;  %3349 = vmatprep.mubr.msk.f32.mxu1 %vm1029_vm2, %v972_v18  ;;  %v975_v27 = vmax.f32 %v741_v20, 0.0  ;;  %v826_v18 = vadd.f32 %v3925_v5, %v3975_v52  ;;  %v821_v20 = vadd.f32 %v3962_v41, %v3925_v5 }
 0x102   : > { %v3253_v24 = vpop.f32.mrf.mxu0  ;;  %3350 = vmatmul.mubr.msk.f32.gmra.mxu1 %vm1029_vm2, %v973_v19  ;;  %v989_v19 = vmax.f32 %v811_v36, 0.0  ;;  %v3298_v21 = vpop.f32.mrf.mxu1  ;;  %v994_v52 = vmax.f32 %v836_v33, 0.0  ;;  %v846_v41 = vadd.f32 %v3925_v5, %v3996_v15 }
 0x103   : > { %v974_v26 = vmax.f32 %v736_v23, 0.0  ;;  %v751_v29 = vadd.f32 %v3253_v24, %v3925_v5  ;;  %v992_v44 = vmax.f32 %v826_v18, 0.0  ;;  %v991_v23 = vmax.f32 %v821_v20, 0.0 }
 0x104   : > { %v745_v30 = vpop.f32.mrf.mxu0  ;;  %v831_v24 = vadd.f32 %v3970_v49, %v3925_v5  ;;  %v996_v0 = vmax.f32 %v846_v41, 0.0  ;;  %v856_v49 = vadd.f32 %v3925_v5, %v4008_v31 }
 0x105   : > { %v746_v32 = vadd.f32 %v3925_v5, %v745_v30  ;;  %3352 = vmatprep.mubr.msk.f32.mxu1 %vm1029_vm2, %v974_v26  ;;  %v977_v37 = vmax.f32 %v751_v29, 0.0  ;;  %v895_v26 = vpop.f32.mrf.mxu1  ;;  %v841_v29 = vadd.f32 %v3978_v57, %v3925_v5  ;;  %v866_v57 = vadd.f32 %v3925_v5, %v4020_v50 }
 0x106   : > { %v3256_v34 = vpop.f32.mrf.mxu0  ;;  %3353 = vmatmul.mubr.msk.f32.gmra.mxu1 %vm1029_vm2, %v975_v27  ;;  %v993_v27 = vmax.f32 %v831_v24, 0.0  ;;  %v998_v15 = vmax.f32 %v856_v49, 0.0 }
 0x107   : > { %v976_v35 = vmax.f32 %v746_v32, 0.0  ;;  %v761_v38 = vadd.f32 %v3256_v34, %v3925_v5  ;;  %v3301_v30 = vpop.f32.mrf.mxu1  ;;  %v995_v32 = vmax.f32 %v841_v29, 0.0  ;;  %v851_v34 = vadd.f32 %v3990_v8, %v3925_v5 }
 0x108   : > { %v755_v39 = vpop.f32.mrf.mxu0  ;;  %v1000_v31 = vmax.f32 %v866_v57, 0.0  ;;  %v876_v8 = vadd.f32 %v3925_v5, %v875_v4 }
 0x109   : > { %v756_v42 = vadd.f32 %v3925_v5, %v755_v39  ;;  %3355 = vmatprep.mubr.msk.f32.mxu1 %vm1029_vm2, %v976_v35  ;;  %v979_v46 = vmax.f32 %v761_v38, 0.0  ;;  %v905_v35 = vpop.f32.mrf.mxu1  ;;  %v861_v38 = vadd.f32 %v4002_v22, %v3925_v5  ;;  %v886_v22 = vadd.f32 %v3925_v5, %v885_v17 }
 0x10a   : > { %v3259_v43 = vpop.f32.mrf.mxu0  ;;  %3356 = vmatmul.mubr.msk.f32.gmra.mxu1 %vm1029_vm2, %v977_v37  ;;  %v997_v37 = vmax.f32 %v851_v34, 0.0 }
 0x10b   : > { %v978_v45 = vmax.f32 %v756_v42, 0.0  ;;  %v771_v47 = vadd.f32 %v3259_v43, %v3925_v5  ;;  %v3304_v39 = vpop.f32.mrf.mxu1  ;;  %v999_v42 = vmax.f32 %v861_v38, 0.0  ;;  %v871_v43 = vadd.f32 %v4014_v40, %v3925_v5 }
 0x10c   : > { %v765_v48 = vpop.f32.mrf.mxu0  ;;  %v896_v40 = vadd.f32 %v3925_v5, %v895_v26 }
 0x10d   : > { %v766_v51 = vadd.f32 %v3925_v5, %v765_v48  ;;  %3358 = vmatprep.mubr.msk.f32.mxu1 %vm1029_vm2, %v978_v45  ;;  %v981_v55 = vmax.f32 %v771_v47, 0.0  ;;  %v915_v45 = vpop.f32.mrf.mxu1  ;;  %v1001_v47 = vmax.f32 %v871_v43, 0.0  ;;  %v881_v48 = vadd.f32 %v4026_v59, %v3925_v5 }
 0x10e   : > { %v3262_v53 = vpop.f32.mrf.mxu0  ;;  %3359 = vmatmul.mubr.msk.f32.gmra.mxu1 %vm1029_vm2, %v979_v46  ;;  %v1002_v46 = vmax.f32 %v876_v8, 0.0  ;;  %v916_v63 = vadd.f32 %v3925_v5, %v915_v45 }
 0x10f   : > { %v980_v54 = vmax.f32 %v766_v51, 0.0  ;;  %v781_v56 = vadd.f32 %v3262_v53, %v3925_v5  ;;  %v3307_v50 = vpop.f32.mrf.mxu1  ;;  %v1004_v51 = vmax.f32 %v886_v22, 0.0  ;;  %v1003_v53 = vmax.f32 %v881_v48, 0.0 }
 0x110   : > { %v775_v58 = vpop.f32.mrf.mxu0  ;;  %v1010_v4 = vmax.f32 %v916_v63, 0.0 }
 0x111   : > { %v776_v60 = vadd.f32 %v3925_v5, %v775_v58  ;;  %3361 = vmatprep.mubr.msk.f32.mxu1 %vm1029_vm2, %v980_v54  ;;  %v983_v1 = vmax.f32 %v781_v56, 0.0  ;;  %v891_v54 = vadd.f32 %v4041_v12, %v3925_v5  ;;  %v1006_v56 = vmax.f32 %v896_v40, 0.0 }
 0x112   : > { %v3265_v61 = vpop.f32.mrf.mxu0  ;;  %3362 = vmatmul.mubr.msk.f32.gmra.mxu1 %vm1029_vm2, %v981_v55  ;;  %v925_v55 = vpop.f32.mrf.mxu1  ;;  %v906_v58 = vadd.f32 %v3925_v5, %v905_v35 }
 0x113   : > { %v982_v62 = vmax.f32 %v776_v60, 0.0  ;;  %v791_v2 = vadd.f32 %v3265_v61, %v3925_v5  ;;  %v1005_v59 = vmax.f32 %v891_v54, 0.0  ;;  %v901_v60 = vadd.f32 %v3298_v21, %v3925_v5 }
 0x114   : > { %v785_v3 = vpop.f32.mrf.mxu0  ;;  %v3310_v61 = vpop.f32.mrf.mxu1 }
 0x115   : > { %v786_v6 = vadd.f32 %v3925_v5, %v785_v3  ;;  %3364 = vmatprep.mubr.msk.f32.mxu1 %vm1029_vm2, %v982_v62  ;;  %v985_v11 = vmax.f32 %v791_v2, 0.0  ;;  %v1008_v62 = vmax.f32 %v906_v58, 0.0  ;;  %v911_v2 = vadd.f32 %v3301_v30, %v3925_v5 }
 0x116   : > { %3365 = vmatmul.mubr.msk.f32.gmra.mxu1 %vm1029_vm2, %v983_v1  ;;  %v1007_v1 = vmax.f32 %v901_v60, 0.0  ;;  %v935_v3 = vpop.f32.mrf.mxu1 }
 0x117   : > { %v984_v7 = vmax.f32 %v786_v6, 0.0  ;;  %v926_v6 = vadd.f32 %v3925_v5, %v925_v55  ;;  %v936_v28 = vadd.f32 %v3925_v5, %v935_v3 }
 0x118   : > { %v3313_v10 = vpop.f32.mrf.mxu1 }
 0x119   : > { %3367 = vmatprep.mubr.msk.f32.mxu1 %vm1029_vm2, %v984_v7  ;;  %v1009_v7 = vmax.f32 %v911_v2, 0.0  ;;  %v951_v20 = vadd.f32 %v3313_v10, %v3925_v5 }
 0x11a   : > { %3368 = vmatmul.mubr.msk.f32.gmra.mxu1 %vm1029_vm2, %v985_v11  ;;  %v1012_v11 = vmax.f32 %v926_v6, 0.0  ;;  %v945_v14 = vpop.f32.mrf.mxu1 }
 0x11b   : > { %3370 = vmatprep.mubr.msk.f32.mxu1 %vm1029_vm2, %v986_v9  ;;  %v921_v9 = vadd.f32 %v3304_v39, %v3925_v5  ;;  %v946_v36 = vadd.f32 %v3925_v5, %v945_v14  ;;  %v1017_v21 = vmax.f32 %v951_v20, 0.0 }
 0x11d   : > { %v1011_v12 = vmax.f32 %v921_v9, 0.0  ;;  %v1016_v18 = vmax.f32 %v946_v36, 0.0 }
 0x11e   : > { %3371 = vmatmul.mubr.msk.f32.gmra.mxu1 %vm1029_vm2, %v987_v16  ;;  %v1014_v16 = vmax.f32 %v936_v28, 0.0 }
 0x11f   : > { %3373 = vmatprep.mubr.msk.f32.mxu1 %vm1029_vm2, %v988_v13  ;;  %v931_v13 = vadd.f32 %v3307_v50, %v3925_v5 }
 0x121   : > { %v1013_v17 = vmax.f32 %v931_v13, 0.0 }
 0x122   : > { %3374 = vmatmul.mubr.msk.f32.gmra.mxu1 %vm1029_vm2, %v989_v19 }
 0x123   : > { %3376 = vmatprep.mubr.msk.f32.mxu1 %vm1029_vm2, %v990_v25  ;;  %v941_v25 = vadd.f32 %v3310_v61, %v3925_v5 }
 0x125   : > { %v1015_v19 = vmax.f32 %v941_v25, 0.0 }
 0x126   : > { %3377 = vmatmul.mubr.msk.f32.gmra.mxu1 %vm1029_vm2, %v991_v23 }
 0x127   : > { %3379 = vmatprep.mubr.msk.f32.mxu1 %vm1029_vm2, %v992_v44  ;;  %v4124_v44 = vld [vmem:[%s4664_s4] ss:$0 sm:$0xff] }
 0x12a   : > { %3380 = vmatmul.mubr.msk.f32.gmra.mxu1 %vm1029_vm2, %v993_v27 }
 0x12b   : > { %3382 = vmatprep.mubr.msk.f32.mxu1 %vm1029_vm2, %v994_v52 }
 0x12e   : > { %3383 = vmatmul.mubr.msk.f32.gmra.mxu1 %vm1029_vm2, %v995_v32 }
 0x12f   : > { %3385 = vmatprep.mubr.msk.f32.mxu1 %vm1029_vm2, %v996_v0 }
 0x132   : > { %3386 = vmatmul.mubr.msk.f32.gmra.mxu1 %vm1029_vm2, %v997_v37 }
 0x133   : > { %3388 = vmatprep.mubr.msk.f32.mxu1 %vm1029_vm2, %v998_v15 }
 0x136   : > { %3389 = vmatmul.mubr.msk.f32.gmra.mxu1 %vm1029_vm2, %v999_v42 }
 0x137   : > { %3391 = vmatprep.mubr.msk.f32.mxu1 %vm1029_vm2, %v1000_v31 }
 0x13a   : > { %3392 = vmatmul.mubr.msk.f32.gmra.mxu1 %vm1029_vm2, %v1001_v47 }
 0x13b   : > { %3394 = vmatprep.mubr.msk.f32.mxu1 %vm1029_vm2, %v1002_v46 }
 0x13e   : > { %3395 = vmatmul.mubr.msk.f32.gmra.mxu1 %vm1029_vm2, %v1003_v53 }
 0x13f   : > { %3397 = vmatprep.mubr.msk.f32.mxu1 %vm1029_vm2, %v1004_v51 }
 0x142   : > { %3398 = vmatmul.mubr.msk.f32.gmra.mxu1 %vm1029_vm2, %v1005_v59 }
 0x143   : > { %3400 = vmatprep.mubr.msk.f32.mxu1 %vm1029_vm2, %v1006_v56 }
 0x146   : > { %3401 = vmatmul.mubr.msk.f32.gmra.mxu1 %vm1029_vm2, %v1007_v1 }
 0x147   : > { %3403 = vmatprep.mubr.msk.f32.mxu1 %vm1029_vm2, %v1008_v62 }
 0x14a   : > { %3404 = vmatmul.mubr.msk.f32.gmra.mxu1 %vm1029_vm2, %v1009_v7 }
 0x14b   : > { %3406 = vmatprep.mubr.msk.f32.mxu1 %vm1029_vm2, %v1010_v4 }
 0x14e   : > { %3407 = vmatmul.mubr.msk.f32.gmra.mxu1 %vm1029_vm2, %v1011_v12 }
 0x14f   : > { %3409 = vmatprep.mubr.msk.f32.mxu1 %vm1029_vm2, %v1012_v11 }
 0x152   : > { %3410 = vmatmul.mubr.msk.f32.gmra.mxu1 %vm1029_vm2, %v1013_v17 }
 0x153   : > { %3412 = vmatprep.mubr.msk.f32.mxu1 %vm1029_vm2, %v1014_v16 }
 0x156   : > { %3413 = vmatmul.mubr.msk.f32.gmra.mxu1 %vm1029_vm2, %v1015_v19 }
 0x157   : > { %3415 = vmatprep.mubr.msk.f32.mxu1 %vm1029_vm2, %v1016_v18 }
 0x15a   : > { %3416 = vmatmul.mubr.msk.f32.gmra.mxu1 %vm1029_vm2, %v1017_v21 }
 0x19e   : > { %v3324_v33 = vpop.f32.mrf.mxu1 }
 0x19f   : > { %v1294_v23 = vadd.f32 %v3324_v33, %v4124_v44 }
 0x1a0   : > { %v1288_v24 = vpop.f32.mrf.mxu1 }
 0x1a1   : > { %v1289_v26 = vadd.f32 %v4124_v44, %v1288_v24  ;;  %v1608_v41 = vmax.f32 %v1294_v23, 0.0 }
 0x1a2   : > { %v3327_v52 = vpop.f32.mrf.mxu1 }
 0x1a3   : > { %v1607_v5 = vmax.f32 %v1289_v26, 0.0  ;;  %v1304_v27 = vadd.f32 %v3327_v52, %v4124_v44 }
 0x1a4   : > { %v1298_v29 = vpop.f32.mrf.mxu1 }
 0x1a5   : > { %v1299_v30 = vadd.f32 %v4124_v44, %v1298_v29  ;;  %3426 = vmatprep.mubr.msk.f32.mxu0 %vm1029_vm2, %v1607_v5  ;;  %v1610_v32 = vmax.f32 %v1304_v27, 0.0 }
 0x1a6   : > { %v3330_v0 = vpop.f32.mrf.mxu1  ;;  %3427 = vmatmul.mubr.msk.f32.vlgmr.msra.gmra.mxu0 %vm1029_vm2, %v1608_v41 }
 0x1a7   : > { %v1609_v49 = vmax.f32 %v1299_v30, 0.0  ;;  %v1314_v34 = vadd.f32 %v3330_v0, %v4124_v44 }
 0x1a8   : > { %v1308_v35 = vpop.f32.mrf.mxu1 }
 0x1a9   : > { %v1309_v15 = vadd.f32 %v4124_v44, %v1308_v35  ;;  %3429 = vmatprep.mubr.msk.f32.mxu0 %vm1029_vm2, %v1609_v49  ;;  %v1612_v38 = vmax.f32 %v1314_v34, 0.0 }
 0x1aa   : > { %v3333_v57 = vpop.f32.mrf.mxu1  ;;  %3430 = vmatmul.mubr.msk.f32.gmra.mxu0 %vm1029_vm2, %v1610_v32 }
 0x1ab   : > { %v1611_v37 = vmax.f32 %v1309_v15, 0.0  ;;  %v1324_v39 = vadd.f32 %v3333_v57, %v4124_v44 }
 0x1ac   : > { %v1318_v31 = vpop.f32.mrf.mxu1 }
 0x1ad   : > { %v1319_v8 = vadd.f32 %v4124_v44, %v1318_v31  ;;  %3432 = vmatprep.mubr.msk.f32.mxu0 %vm1029_vm2, %v1611_v37  ;;  %v1614_v45 = vmax.f32 %v1324_v39, 0.0 }
 0x1ae   : > { %v3336_v42 = vpop.f32.mrf.mxu1  ;;  %3433 = vmatmul.mubr.msk.f32.gmra.mxu0 %vm1029_vm2, %v1612_v38 }
 0x1af   : > { %v1613_v43 = vmax.f32 %v1319_v8, 0.0  ;;  %v1334_v46 = vadd.f32 %v3336_v42, %v4124_v44 }
 0x1b0   : > { %v1328_v22 = vpop.f32.mrf.mxu1 }
 0x1b1   : > { %v1329_v47 = vadd.f32 %v4124_v44, %v1328_v22  ;;  %3435 = vmatprep.mubr.msk.f32.mxu0 %vm1029_vm2, %v1613_v43  ;;  %v1616_v51 = vmax.f32 %v1334_v46, 0.0 }
 0x1b2   : > { %v3339_v48 = vpop.f32.mrf.mxu1  ;;  %3436 = vmatmul.mubr.msk.f32.gmra.mxu0 %vm1029_vm2, %v1614_v45 }
 0x1b3   : > { %v1615_v50 = vmax.f32 %v1329_v47, 0.0  ;;  %v1344_v40 = vadd.f32 %v3339_v48, %v4124_v44 }
 0x1b4   : > { %v1338_v53 = vpop.f32.mrf.mxu1 }
 0x1b5   : > { %v1339_v54 = vadd.f32 %v4124_v44, %v1338_v53  ;;  %3438 = vmatprep.mubr.msk.f32.mxu0 %vm1029_vm2, %v1615_v50  ;;  %v1618_v58 = vmax.f32 %v1344_v40, 0.0 }
 0x1b6   : > { %v3342_v55 = vpop.f32.mrf.mxu1  ;;  %3439 = vmatmul.mubr.msk.f32.gmra.mxu0 %vm1029_vm2, %v1616_v51 }
 0x1b7   : > { %v1617_v56 = vmax.f32 %v1339_v54, 0.0  ;;  %v1354_v59 = vadd.f32 %v3342_v55, %v4124_v44 }
 0x1b8   : > { %v1348_v60 = vpop.f32.mrf.mxu1 }
 0x1b9   : > { %v1349_v61 = vadd.f32 %v4124_v44, %v1348_v60  ;;  %3441 = vmatprep.mubr.msk.f32.mxu0 %vm1029_vm2, %v1617_v56  ;;  %v1620_v1 = vmax.f32 %v1354_v59, 0.0 }
 0x1ba   : > { %v3345_v62 = vpop.f32.mrf.mxu1  ;;  %3442 = vmatmul.mubr.msk.f32.gmra.mxu0 %vm1029_vm2, %v1618_v58 }
 0x1bb   : > { %v1619_v63 = vmax.f32 %v1349_v61, 0.0  ;;  %v1364_v2 = vadd.f32 %v3345_v62, %v4124_v44 }
 0x1bc   : > { %v1358_v3 = vpop.f32.mrf.mxu1 }
 0x1bd   : > { %v1359_v4 = vadd.f32 %v4124_v44, %v1358_v3  ;;  %3444 = vmatprep.mubr.msk.f32.mxu0 %vm1029_vm2, %v1619_v63  ;;  %v1622_v9 = vmax.f32 %v1364_v2, 0.0 }
 0x1be   : > { %v3348_v6 = vpop.f32.mrf.mxu1  ;;  %3445 = vmatmul.mubr.msk.f32.gmra.mxu0 %vm1029_vm2, %v1620_v1 }
 0x1bf   : > { %v1621_v7 = vmax.f32 %v1359_v4, 0.0  ;;  %v1374_v10 = vadd.f32 %v3348_v6, %v4124_v44 }
 0x1c0   : > { %v1368_v11 = vpop.f32.mrf.mxu1 }
 0x1c1   : > { %v1369_v28 = vadd.f32 %v4124_v44, %v1368_v11  ;;  %3447 = vmatprep.mubr.msk.f32.mxu0 %vm1029_vm2, %v1621_v7  ;;  %v1624_v14 = vmax.f32 %v1374_v10, 0.0 }
 0x1c2   : > { %v3351_v12 = vpop.f32.mrf.mxu1  ;;  %3448 = vmatmul.mubr.msk.f32.gmra.mxu0 %vm1029_vm2, %v1622_v9 }
 0x1c3   : > { %v1623_v13 = vmax.f32 %v1369_v28, 0.0  ;;  %v1384_v16 = vadd.f32 %v3351_v12, %v4124_v44 }
 0x1c4   : > { %v1378_v36 = vpop.f32.mrf.mxu1 }
 0x1c5   : > { %v1379_v17 = vadd.f32 %v4124_v44, %v1378_v36  ;;  %3450 = vmatprep.mubr.msk.f32.mxu0 %vm1029_vm2, %v1623_v13  ;;  %v1626_v19 = vmax.f32 %v1384_v16, 0.0 }
 0x1c6   : > { %v3354_v25 = vpop.f32.mrf.mxu1  ;;  %3451 = vmatmul.mubr.msk.f32.gmra.mxu0 %vm1029_vm2, %v1624_v14 }
 0x1c7   : > { %v1625_v18 = vmax.f32 %v1379_v17, 0.0  ;;  %v1394_v20 = vadd.f32 %v3354_v25, %v4124_v44 }
 0x1c8   : > { %v1388_v21 = vpop.f32.mrf.mxu1 }
 0x1c9   : > { %v1389_v33 = vadd.f32 %v4124_v44, %v1388_v21  ;;  %3453 = vmatprep.mubr.msk.f32.mxu0 %vm1029_vm2, %v1625_v18  ;;  %v1628_v26 = vmax.f32 %v1394_v20, 0.0 }
 0x1ca   : > { %v3357_v23 = vpop.f32.mrf.mxu1  ;;  %3454 = vmatmul.mubr.msk.f32.gmra.mxu0 %vm1029_vm2, %v1626_v19 }
 0x1cb   : > { %v1627_v24 = vmax.f32 %v1389_v33, 0.0  ;;  %v1404_v52 = vadd.f32 %v3357_v23, %v4124_v44 }
 0x1cc   : > { %v1398_v5 = vpop.f32.mrf.mxu1 }
 0x1cd   : > { %v1399_v41 = vadd.f32 %v4124_v44, %v1398_v5  ;;  %3456 = vmatprep.mubr.msk.f32.mxu0 %vm1029_vm2, %v1627_v24  ;;  %v1630_v30 = vmax.f32 %v1404_v52, 0.0 }
 0x1ce   : > { %v3360_v27 = vpop.f32.mrf.mxu1  ;;  %3457 = vmatmul.mubr.msk.f32.gmra.mxu0 %vm1029_vm2, %v1628_v26 }
 0x1cf   : > { %v1629_v29 = vmax.f32 %v1399_v41, 0.0  ;;  %v1414_v0 = vadd.f32 %v3360_v27, %v4124_v44 }
 0x1d0   : > { %v1408_v49 = vpop.f32.mrf.mxu1 }
 0x1d1   : > { %v1409_v32 = vadd.f32 %v4124_v44, %v1408_v49  ;;  %3459 = vmatprep.mubr.msk.f32.mxu0 %vm1029_vm2, %v1629_v29  ;;  %v1632_v15 = vmax.f32 %v1414_v0, 0.0 }
 0x1d2   : > { %v3363_v34 = vpop.f32.mrf.mxu1  ;;  %3460 = vmatmul.mubr.msk.f32.gmra.mxu0 %vm1029_vm2, %v1630_v30 }
 0x1d3   : > { %v1631_v35 = vmax.f32 %v1409_v32, 0.0  ;;  %v1424_v57 = vadd.f32 %v3363_v34, %v4124_v44 }
 0x1d4   : > { %v1418_v37 = vpop.f32.mrf.mxu1 }
 0x1d5   : > { %v1419_v38 = vadd.f32 %v4124_v44, %v1418_v37  ;;  %3462 = vmatprep.mubr.msk.f32.mxu0 %vm1029_vm2, %v1631_v35  ;;  %v1634_v8 = vmax.f32 %v1424_v57, 0.0 }
 0x1d6   : > { %v3366_v39 = vpop.f32.mrf.mxu1  ;;  %3463 = vmatmul.mubr.msk.f32.gmra.mxu0 %vm1029_vm2, %v1632_v15 }
 0x1d7   : > { %v1633_v31 = vmax.f32 %v1419_v38, 0.0  ;;  %v1434_v42 = vadd.f32 %v3366_v39, %v4124_v44 }
 0x1d8   : > { %v1428_v43 = vpop.f32.mrf.mxu1 }
 0x1d9   : > { %v1429_v45 = vadd.f32 %v4124_v44, %v1428_v43  ;;  %3465 = vmatprep.mubr.msk.f32.mxu0 %vm1029_vm2, %v1633_v31  ;;  %v1636_v47 = vmax.f32 %v1434_v42, 0.0 }
 0x1da   : > { %v3369_v46 = vpop.f32.mrf.mxu1  ;;  %3466 = vmatmul.mubr.msk.f32.gmra.mxu0 %vm1029_vm2, %v1634_v8 }
 0x1db   : > { %v1635_v22 = vmax.f32 %v1429_v45, 0.0  ;;  %v1444_v48 = vadd.f32 %v3369_v46, %v4124_v44 }
 0x1dc   : > { %v1438_v50 = vpop.f32.mrf.mxu1 }
 0x1dd   : > { %v1439_v51 = vadd.f32 %v4124_v44, %v1438_v50  ;;  %3468 = vmatprep.mubr.msk.f32.mxu0 %vm1029_vm2, %v1635_v22  ;;  %v1638_v54 = vmax.f32 %v1444_v48, 0.0 }
 0x1de   : > { %v3372_v40 = vpop.f32.mrf.mxu1  ;;  %3469 = vmatmul.mubr.msk.f32.gmra.mxu0 %vm1029_vm2, %v1636_v47 }
 0x1df   : > { %v1637_v53 = vmax.f32 %v1439_v51, 0.0  ;;  %v1454_v55 = vadd.f32 %v3372_v40, %v4124_v44 }
 0x1e0   : > { %v1448_v56 = vpop.f32.mrf.mxu1 }
 0x1e1   : > { %v1449_v58 = vadd.f32 %v4124_v44, %v1448_v56  ;;  %3471 = vmatprep.mubr.msk.f32.mxu0 %vm1029_vm2, %v1637_v53  ;;  %v1640_v61 = vmax.f32 %v1454_v55, 0.0 }
 0x1e2   : > { %v3375_v59 = vpop.f32.mrf.mxu1  ;;  %3472 = vmatmul.mubr.msk.f32.gmra.mxu0 %vm1029_vm2, %v1638_v54 }
 0x1e3   : > { %v1639_v60 = vmax.f32 %v1449_v58, 0.0  ;;  %v1464_v62 = vadd.f32 %v3375_v59, %v4124_v44 }
 0x1e4   : > { %v1458_v63 = vpop.f32.mrf.mxu1 }
 0x1e5   : > { %v1459_v1 = vadd.f32 %v4124_v44, %v1458_v63  ;;  %3474 = vmatprep.mubr.msk.f32.mxu0 %vm1029_vm2, %v1639_v60  ;;  %v1642_v4 = vmax.f32 %v1464_v62, 0.0 }
 0x1e6   : > { %v3378_v2 = vpop.f32.mrf.mxu1  ;;  %3475 = vmatmul.mubr.msk.f32.gmra.mxu0 %vm1029_vm2, %v1640_v61 }
 0x1e7   : > { %v1641_v3 = vmax.f32 %v1459_v1, 0.0  ;;  %v1474_v6 = vadd.f32 %v3378_v2, %v4124_v44 }
 0x1e8   : > { %v1468_v7 = vpop.f32.mrf.mxu1 }
 0x1e9   : > { %v1469_v9 = vadd.f32 %v4124_v44, %v1468_v7  ;;  %3477 = vmatprep.mubr.msk.f32.mxu0 %vm1029_vm2, %v1641_v3  ;;  %v1644_v28 = vmax.f32 %v1474_v6, 0.0 }
 0x1ea   : > { %v3381_v10 = vpop.f32.mrf.mxu1  ;;  %3478 = vmatmul.mubr.msk.f32.gmra.mxu0 %vm1029_vm2, %v1642_v4 }
 0x1eb   : > { %v1643_v11 = vmax.f32 %v1469_v9, 0.0  ;;  %v1484_v12 = vadd.f32 %v3381_v10, %v4124_v44 }
 0x1ec   : > { %v1478_v13 = vpop.f32.mrf.mxu1 }
 0x1ed   : > { %v1479_v14 = vadd.f32 %v4124_v44, %v1478_v13  ;;  %3480 = vmatprep.mubr.msk.f32.mxu0 %vm1029_vm2, %v1643_v11  ;;  %v1646_v17 = vmax.f32 %v1484_v12, 0.0 }
 0x1ee   : > { %v3384_v16 = vpop.f32.mrf.mxu1  ;;  %3481 = vmatmul.mubr.msk.f32.gmra.mxu0 %vm1029_vm2, %v1644_v28 }
 0x1ef   : > { %v1645_v36 = vmax.f32 %v1479_v14, 0.0  ;;  %v1494_v25 = vadd.f32 %v3384_v16, %v4124_v44 }
 0x1f0   : > { %v1488_v18 = vpop.f32.mrf.mxu1 }
 0x1f1   : > { %v1489_v19 = vadd.f32 %v4124_v44, %v1488_v18  ;;  %3483 = vmatprep.mubr.msk.f32.mxu0 %vm1029_vm2, %v1645_v36  ;;  %v1648_v33 = vmax.f32 %v1494_v25, 0.0 }
 0x1f2   : > { %v3387_v20 = vpop.f32.mrf.mxu1  ;;  %3484 = vmatmul.mubr.msk.f32.gmra.mxu0 %vm1029_vm2, %v1646_v17 }
 0x1f3   : > { %v1647_v21 = vmax.f32 %v1489_v19, 0.0  ;;  %v1504_v23 = vadd.f32 %v3387_v20, %v4124_v44 }
 0x1f4   : > { %v1498_v24 = vpop.f32.mrf.mxu1 }
 0x1f5   : > { %v1499_v26 = vadd.f32 %v4124_v44, %v1498_v24  ;;  %3486 = vmatprep.mubr.msk.f32.mxu0 %vm1029_vm2, %v1647_v21  ;;  %v1650_v41 = vmax.f32 %v1504_v23, 0.0 }
 0x1f6   : > { %v3390_v52 = vpop.f32.mrf.mxu1  ;;  %3487 = vmatmul.mubr.msk.f32.gmra.mxu0 %vm1029_vm2, %v1648_v33 }
 0x1f7   : > { %v1649_v5 = vmax.f32 %v1499_v26, 0.0  ;;  %v1514_v27 = vadd.f32 %v3390_v52, %v4124_v44  ;;  %v4258_v26 = vld [vmem:[%s4666_s6] ss:$0 sm:$0xff] }
 0x1f8   : > { %v1508_v29 = vpop.f32.mrf.mxu1 }
 0x1f9   : > { %v1509_v30 = vadd.f32 %v4124_v44, %v1508_v29  ;;  %3489 = vmatprep.mubr.msk.f32.mxu0 %vm1029_vm2, %v1649_v5  ;;  %v1652_v32 = vmax.f32 %v1514_v27, 0.0 }
 0x1fa   : > { %v3393_v0 = vpop.f32.mrf.mxu1  ;;  %3490 = vmatmul.mubr.msk.f32.gmra.mxu0 %vm1029_vm2, %v1650_v41 }
 0x1fb   : > { %v1651_v49 = vmax.f32 %v1509_v30, 0.0  ;;  %v1524_v34 = vadd.f32 %v3393_v0, %v4124_v44 }
 0x1fc   : > { %v1518_v35 = vpop.f32.mrf.mxu1 }
 0x1fd   : > { %v1519_v15 = vadd.f32 %v4124_v44, %v1518_v35  ;;  %3492 = vmatprep.mubr.msk.f32.mxu0 %vm1029_vm2, %v1651_v49  ;;  %v1654_v38 = vmax.f32 %v1524_v34, 0.0 }
 0x1fe   : > { %v3396_v57 = vpop.f32.mrf.mxu1  ;;  %3493 = vmatmul.mubr.msk.f32.gmra.mxu0 %vm1029_vm2, %v1652_v32 }
 0x1ff   : > { %v1653_v37 = vmax.f32 %v1519_v15, 0.0  ;;  %v1534_v39 = vadd.f32 %v3396_v57, %v4124_v44 }
 0x200   : > { %v1528_v31 = vpop.f32.mrf.mxu1 }
 0x201   : > { %v1529_v8 = vadd.f32 %v4124_v44, %v1528_v31  ;;  %3495 = vmatprep.mubr.msk.f32.mxu0 %vm1029_vm2, %v1653_v37  ;;  %v1656_v45 = vmax.f32 %v1534_v39, 0.0 }
 0x202   : > { %v3399_v42 = vpop.f32.mrf.mxu1  ;;  %3496 = vmatmul.mubr.msk.f32.gmra.mxu0 %vm1029_vm2, %v1654_v38 }
 0x203   : > { %v1655_v43 = vmax.f32 %v1529_v8, 0.0  ;;  %v1544_v46 = vadd.f32 %v3399_v42, %v4124_v44 }
 0x204   : > { %v1538_v22 = vpop.f32.mrf.mxu1 }
 0x205   : > { %v1539_v47 = vadd.f32 %v4124_v44, %v1538_v22  ;;  %3498 = vmatprep.mubr.msk.f32.mxu0 %vm1029_vm2, %v1655_v43  ;;  %v1658_v51 = vmax.f32 %v1544_v46, 0.0 }
 0x206   : > { %v3402_v48 = vpop.f32.mrf.mxu1  ;;  %3499 = vmatmul.mubr.msk.f32.gmra.mxu0 %vm1029_vm2, %v1656_v45 }
 0x207   : > { %v1657_v50 = vmax.f32 %v1539_v47, 0.0  ;;  %v1554_v40 = vadd.f32 %v3402_v48, %v4124_v44 }
 0x208   : > { %v1548_v53 = vpop.f32.mrf.mxu1 }
 0x209   : > { %v1549_v54 = vadd.f32 %v4124_v44, %v1548_v53  ;;  %3501 = vmatprep.mubr.msk.f32.mxu0 %vm1029_vm2, %v1657_v50  ;;  %v1660_v58 = vmax.f32 %v1554_v40, 0.0 }
 0x20a   : > { %v3405_v55 = vpop.f32.mrf.mxu1  ;;  %3502 = vmatmul.mubr.msk.f32.gmra.mxu0 %vm1029_vm2, %v1658_v51 }
 0x20b   : > { %v1659_v56 = vmax.f32 %v1549_v54, 0.0  ;;  %v1564_v59 = vadd.f32 %v3405_v55, %v4124_v44 }
 0x20c   : > { %v1558_v60 = vpop.f32.mrf.mxu1 }
 0x20d   : > { %v1559_v61 = vadd.f32 %v4124_v44, %v1558_v60  ;;  %3504 = vmatprep.mubr.msk.f32.mxu0 %vm1029_vm2, %v1659_v56  ;;  %v1662_v1 = vmax.f32 %v1564_v59, 0.0 }
 0x20e   : > { %v3408_v62 = vpop.f32.mrf.mxu1  ;;  %3505 = vmatmul.mubr.msk.f32.gmra.mxu0 %vm1029_vm2, %v1660_v58 }
 0x20f   : > { %v1661_v63 = vmax.f32 %v1559_v61, 0.0  ;;  %v1574_v2 = vadd.f32 %v3408_v62, %v4124_v44 }
 0x210   : > { %v1568_v3 = vpop.f32.mrf.mxu1 }
 0x211   : > { %v1569_v4 = vadd.f32 %v4124_v44, %v1568_v3  ;;  %3507 = vmatprep.mubr.msk.f32.mxu0 %vm1029_vm2, %v1661_v63  ;;  %v1664_v9 = vmax.f32 %v1574_v2, 0.0 }
 0x212   : > { %v3411_v6 = vpop.f32.mrf.mxu1  ;;  %3508 = vmatmul.mubr.msk.f32.gmra.mxu0 %vm1029_vm2, %v1662_v1 }
 0x213   : > { %v1663_v7 = vmax.f32 %v1569_v4, 0.0  ;;  %v1584_v10 = vadd.f32 %v3411_v6, %v4124_v44 }
 0x214   : > { %v1578_v11 = vpop.f32.mrf.mxu1 }
 0x215   : > { %v1579_v28 = vadd.f32 %v4124_v44, %v1578_v11  ;;  %3510 = vmatprep.mubr.msk.f32.mxu0 %vm1029_vm2, %v1663_v7  ;;  %v1666_v14 = vmax.f32 %v1584_v10, 0.0 }
 0x216   : > { %v3414_v12 = vpop.f32.mrf.mxu1  ;;  %3511 = vmatmul.mubr.msk.f32.gmra.mxu0 %vm1029_vm2, %v1664_v9 }
 0x217   : > { %v1665_v13 = vmax.f32 %v1579_v28, 0.0  ;;  %v1594_v16 = vadd.f32 %v3414_v12, %v4124_v44 }
 0x218   : > { %v1588_v36 = vpop.f32.mrf.mxu1 }
 0x219   : > { %v1589_v17 = vadd.f32 %v4124_v44, %v1588_v36  ;;  %3513 = vmatprep.mubr.msk.f32.mxu0 %vm1029_vm2, %v1665_v13  ;;  %v1668_v19 = vmax.f32 %v1594_v16, 0.0 }
 0x21a   : > { %v3417_v25 = vpop.f32.mrf.mxu1  ;;  %3514 = vmatmul.mubr.msk.f32.gmra.mxu0 %vm1029_vm2, %v1666_v14 }
 0x21b   : > { %v1667_v18 = vmax.f32 %v1589_v17, 0.0  ;;  %v1604_v20 = vadd.f32 %v3417_v25, %v4124_v44 }
 0x21c   : > { %v1598_v21 = vpop.f32.mrf.mxu1 }
 0x21d   : > { %v1599_v33 = vadd.f32 %v4124_v44, %v1598_v21  ;;  %3516 = vmatprep.mubr.msk.f32.mxu0 %vm1029_vm2, %v1667_v18  ;;  %v1670_v24 = vmax.f32 %v1604_v20, 0.0 }
 0x21e   : > { %3517 = vmatmul.mubr.msk.f32.gmra.mxu0 %vm1029_vm2, %v1668_v19 }
 0x21f   : > { %v1669_v23 = vmax.f32 %v1599_v33, 0.0 }
 0x221   : > { %3519 = vmatprep.mubr.msk.f32.mxu0 %vm1029_vm2, %v1669_v23 }
 0x222   : > { %3520 = vmatmul.mubr.msk.f32.gmra.mxu0 %vm1029_vm2, %v1670_v24 }
 0x266   : > { %v3428_v52 = vpop.f32.mrf.mxu0 }
 0x267   : > { %v1946_v44 = vadd.f32 %v3428_v52, %v4258_v26 }
 0x268   : > { %v1940_v5 = vpop.f32.mrf.mxu0 }
 0x269   : > { %2261 = vst.msk [vmem:[%s4261_s30 + $0x8] sm:$0xff] %vm2259_vm3, %v1946_v44  ;;  %v1941_v41 = vadd.f32 %v4258_v26, %v1940_v5 }
 0x26a   : > { %v3431_v27 = vpop.f32.mrf.mxu0 }
 0x26b   : > { %2260 = vst.msk [vmem:[%s4261_s30] sm:$0xff] %vm2259_vm3, %v1941_v41  ;;  %v1956_v29 = vadd.f32 %v3431_v27, %v4258_v26 }
 0x26c   : > { %v1950_v30 = vpop.f32.mrf.mxu0 }
 0x26d   : > { %2263 = vst.msk [vmem:[%s4261_s30 + $0x18] sm:$0xff] %vm2259_vm3, %v1956_v29  ;;  %v1951_v0 = vadd.f32 %v4258_v26, %v1950_v30 }
 0x26e   : > { %v3434_v49 = vpop.f32.mrf.mxu0 }
 0x26f   : > { %2262 = vst.msk [vmem:[%s4261_s30 + $0x10] sm:$0xff] %vm2259_vm3, %v1951_v0  ;;  %v1966_v32 = vadd.f32 %v3434_v49, %v4258_v26 }
 0x270   : > { %v1960_v34 = vpop.f32.mrf.mxu0 }
 0x271   : > { %2265 = vst.msk [vmem:[%s4261_s30 + $0x28] sm:$0xff] %vm2259_vm3, %v1966_v32  ;;  %v1961_v35 = vadd.f32 %v4258_v26, %v1960_v34 }
 0x272   : > { %v3437_v15 = vpop.f32.mrf.mxu0 }
 0x273   : > { %2264 = vst.msk [vmem:[%s4261_s30 + $0x20] sm:$0xff] %vm2259_vm3, %v1961_v35  ;;  %v1976_v57 = vadd.f32 %v3437_v15, %v4258_v26 }
 0x274   : > { %v1970_v37 = vpop.f32.mrf.mxu0 }
 0x275   : > { %2267 = vst.msk [vmem:[%s4261_s30 + $0x38] sm:$0xff] %vm2259_vm3, %v1976_v57  ;;  %v1971_v38 = vadd.f32 %v4258_v26, %v1970_v37 }
 0x276   : > { %v3440_v39 = vpop.f32.mrf.mxu0 }
 0x277   : > { %2266 = vst.msk [vmem:[%s4261_s30 + $0x30] sm:$0xff] %vm2259_vm3, %v1971_v38  ;;  %v1986_v31 = vadd.f32 %v3440_v39, %v4258_v26 }
 0x278   : > { %v1980_v8 = vpop.f32.mrf.mxu0 }
 0x279   : > { %2269 = vst.msk [vmem:[%s4261_s30 + $0x48] sm:$0xff] %vm2259_vm3, %v1986_v31  ;;  %v1981_v42 = vadd.f32 %v4258_v26, %v1980_v8 }
 0x27a   : > { %v3443_v43 = vpop.f32.mrf.mxu0 }
 0x27b   : > { %2268 = vst.msk [vmem:[%s4261_s30 + $0x40] sm:$0xff] %vm2259_vm3, %v1981_v42  ;;  %v1996_v45 = vadd.f32 %v3443_v43, %v4258_v26 }
 0x27c   : > { %v1990_v46 = vpop.f32.mrf.mxu0 }
 0x27d   : > { %2271 = vst.msk [vmem:[%s4261_s30 + $0x58] sm:$0xff] %vm2259_vm3, %v1996_v45  ;;  %v1991_v22 = vadd.f32 %v4258_v26, %v1990_v46 }
 0x27e   : > { %v3446_v47 = vpop.f32.mrf.mxu0 }
 0x27f   : > { %2270 = vst.msk [vmem:[%s4261_s30 + $0x50] sm:$0xff] %vm2259_vm3, %v1991_v22  ;;  %v2006_v48 = vadd.f32 %v3446_v47, %v4258_v26 }
 0x280   : > { %v2000_v50 = vpop.f32.mrf.mxu0 }
 0x281   : > { %2273 = vst.msk [vmem:[%s4261_s30 + $0x68] sm:$0xff] %vm2259_vm3, %v2006_v48  ;;  %v2001_v51 = vadd.f32 %v4258_v26, %v2000_v50 }
 0x282   : > { %v3449_v40 = vpop.f32.mrf.mxu0 }
 0x283   : > { %2272 = vst.msk [vmem:[%s4261_s30 + $0x60] sm:$0xff] %vm2259_vm3, %v2001_v51  ;;  %v2016_v53 = vadd.f32 %v3449_v40, %v4258_v26 }
 0x284   : > { %v2010_v54 = vpop.f32.mrf.mxu0 }
 0x285   : > { %2275 = vst.msk [vmem:[%s4261_s30 + $0x78] sm:$0xff] %vm2259_vm3, %v2016_v53  ;;  %v2011_v55 = vadd.f32 %v4258_v26, %v2010_v54 }
 0x286   : > { %v3452_v56 = vpop.f32.mrf.mxu0 }
 0x287   : > { %2274 = vst.msk [vmem:[%s4261_s30 + $0x70] sm:$0xff] %vm2259_vm3, %v2011_v55  ;;  %v2026_v58 = vadd.f32 %v3452_v56, %v4258_v26 }
 0x288   : > { %v2020_v59 = vpop.f32.mrf.mxu0 }
 0x289   : > { %2277 = vst.msk [vmem:[%s4261_s30 + $0x88] sm:$0xff] %vm2259_vm3, %v2026_v58  ;;  %v2021_v60 = vadd.f32 %v4258_v26, %v2020_v59 }
 0x28a   : > { %v3455_v61 = vpop.f32.mrf.mxu0 }
 0x28b   : > { %2276 = vst.msk [vmem:[%s4261_s30 + $0x80] sm:$0xff] %vm2259_vm3, %v2021_v60  ;;  %v2036_v62 = vadd.f32 %v3455_v61, %v4258_v26 }
 0x28c   : > { %v2030_v63 = vpop.f32.mrf.mxu0 }
 0x28d   : > { %2279 = vst.msk [vmem:[%s4261_s30 + $0x98] sm:$0xff] %vm2259_vm3, %v2036_v62  ;;  %v2031_v1 = vadd.f32 %v4258_v26, %v2030_v63 }
 0x28e   : > { %v3458_v2 = vpop.f32.mrf.mxu0 }
 0x28f   : > { %2278 = vst.msk [vmem:[%s4261_s30 + $0x90] sm:$0xff] %vm2259_vm3, %v2031_v1  ;;  %v2046_v3 = vadd.f32 %v3458_v2, %v4258_v26 }
 0x290   : > { %v2040_v4 = vpop.f32.mrf.mxu0 }
 0x291   : > { %2281 = vst.msk [vmem:[%s4261_s30 + $0xa8] sm:$0xff] %vm2259_vm3, %v2046_v3  ;;  %v2041_v6 = vadd.f32 %v4258_v26, %v2040_v4 }
 0x292   : > { %v3461_v7 = vpop.f32.mrf.mxu0 }
 0x293   : > { %2280 = vst.msk [vmem:[%s4261_s30 + $0xa0] sm:$0xff] %vm2259_vm3, %v2041_v6  ;;  %v2056_v9 = vadd.f32 %v3461_v7, %v4258_v26 }
 0x294   : > { %v2050_v10 = vpop.f32.mrf.mxu0 }
 0x295   : > { %2283 = vst.msk [vmem:[%s4261_s30 + $0xb8] sm:$0xff] %vm2259_vm3, %v2056_v9  ;;  %v2051_v11 = vadd.f32 %v4258_v26, %v2050_v10 }
 0x296   : > { %v3464_v28 = vpop.f32.mrf.mxu0 }
 0x297   : > { %2282 = vst.msk [vmem:[%s4261_s30 + $0xb0] sm:$0xff] %vm2259_vm3, %v2051_v11  ;;  %v2066_v12 = vadd.f32 %v3464_v28, %v4258_v26 }
 0x298   : > { %v2060_v13 = vpop.f32.mrf.mxu0 }
 0x299   : > { %2285 = vst.msk [vmem:[%s4261_s30 + $0xc8] sm:$0xff] %vm2259_vm3, %v2066_v12  ;;  %v2061_v14 = vadd.f32 %v4258_v26, %v2060_v13 }
 0x29a   : > { %v3467_v16 = vpop.f32.mrf.mxu0 }
 0x29b   : > { %2284 = vst.msk [vmem:[%s4261_s30 + $0xc0] sm:$0xff] %vm2259_vm3, %v2061_v14  ;;  %v2076_v36 = vadd.f32 %v3467_v16, %v4258_v26 }
 0x29c   : > { %v2070_v17 = vpop.f32.mrf.mxu0 }
 0x29d   : > { %2287 = vst.msk [vmem:[%s4261_s30 + $0xd8] sm:$0xff] %vm2259_vm3, %v2076_v36  ;;  %v2071_v25 = vadd.f32 %v4258_v26, %v2070_v17 }
 0x29e   : > { %v3470_v18 = vpop.f32.mrf.mxu0 }
 0x29f   : > { %2286 = vst.msk [vmem:[%s4261_s30 + $0xd0] sm:$0xff] %vm2259_vm3, %v2071_v25  ;;  %v2086_v19 = vadd.f32 %v3470_v18, %v4258_v26 }
 0x2a0   : > { %v2080_v20 = vpop.f32.mrf.mxu0 }
 0x2a1   : > { %2289 = vst.msk [vmem:[%s4261_s30 + $0xe8] sm:$0xff] %vm2259_vm3, %v2086_v19  ;;  %v2081_v21 = vadd.f32 %v4258_v26, %v2080_v20 }
 0x2a2   : > { %v3473_v33 = vpop.f32.mrf.mxu0 }
 0x2a3   : > { %2288 = vst.msk [vmem:[%s4261_s30 + $0xe0] sm:$0xff] %vm2259_vm3, %v2081_v21  ;;  %v2096_v23 = vadd.f32 %v3473_v33, %v4258_v26 }
 0x2a4   : > { %v2090_v24 = vpop.f32.mrf.mxu0 }
 0x2a5   : > { %2291 = vst.msk [vmem:[%s4261_s30 + $0xf8] sm:$0xff] %vm2259_vm3, %v2096_v23  ;;  %v2091_v52 = vadd.f32 %v4258_v26, %v2090_v24 }
 0x2a6   : > { %v3476_v44 = vpop.f32.mrf.mxu0 }
 0x2a7   : > { %2290 = vst.msk [vmem:[%s4261_s30 + $0xf0] sm:$0xff] %vm2259_vm3, %v2091_v52  ;;  %v2106_v5 = vadd.f32 %v3476_v44, %v4258_v26 }
 0x2a8   : > { %v2100_v41 = vpop.f32.mrf.mxu0 }
 0x2a9   : > { %2293 = vst.msk [vmem:[%s4261_s30 + $0x108] sm:$0xff] %vm2259_vm3, %v2106_v5  ;;  %v2101_v27 = vadd.f32 %v4258_v26, %v2100_v41 }
 0x2aa   : > { %v3479_v29 = vpop.f32.mrf.mxu0 }
 0x2ab   : > { %2292 = vst.msk [vmem:[%s4261_s30 + $0x100] sm:$0xff] %vm2259_vm3, %v2101_v27  ;;  %v2116_v30 = vadd.f32 %v3479_v29, %v4258_v26 }
 0x2ac   : > { %v2110_v0 = vpop.f32.mrf.mxu0 }
 0x2ad   : > { %2295 = vst.msk [vmem:[%s4261_s30 + $0x118] sm:$0xff] %vm2259_vm3, %v2116_v30  ;;  %v2111_v49 = vadd.f32 %v4258_v26, %v2110_v0 }
 0x2ae   : > { %v3482_v32 = vpop.f32.mrf.mxu0 }
 0x2af   : > { %2294 = vst.msk [vmem:[%s4261_s30 + $0x110] sm:$0xff] %vm2259_vm3, %v2111_v49  ;;  %v2126_v34 = vadd.f32 %v3482_v32, %v4258_v26 }
 0x2b0   : > { %v2120_v35 = vpop.f32.mrf.mxu0 }
 0x2b1   : > { %2297 = vst.msk [vmem:[%s4261_s30 + $0x128] sm:$0xff] %vm2259_vm3, %v2126_v34  ;;  %v2121_v15 = vadd.f32 %v4258_v26, %v2120_v35 }
 0x2b2   : > { %v3485_v57 = vpop.f32.mrf.mxu0 }
 0x2b3   : > { %2296 = vst.msk [vmem:[%s4261_s30 + $0x120] sm:$0xff] %vm2259_vm3, %v2121_v15  ;;  %v2136_v37 = vadd.f32 %v3485_v57, %v4258_v26 }
 0x2b4   : > { %v2130_v38 = vpop.f32.mrf.mxu0 }
 0x2b5   : > { %2299 = vst.msk [vmem:[%s4261_s30 + $0x138] sm:$0xff] %vm2259_vm3, %v2136_v37  ;;  %v2131_v39 = vadd.f32 %v4258_v26, %v2130_v38 }
 0x2b6   : > { %v3488_v31 = vpop.f32.mrf.mxu0 }
 0x2b7   : > { %2298 = vst.msk [vmem:[%s4261_s30 + $0x130] sm:$0xff] %vm2259_vm3, %v2131_v39  ;;  %v2146_v8 = vadd.f32 %v3488_v31, %v4258_v26 }
 0x2b8   : > { %v2140_v42 = vpop.f32.mrf.mxu0 }
 0x2b9   : > { %2301 = vst.msk [vmem:[%s4261_s30 + $0x148] sm:$0xff] %vm2259_vm3, %v2146_v8  ;;  %v2141_v43 = vadd.f32 %v4258_v26, %v2140_v42 }
 0x2ba   : > { %v3491_v45 = vpop.f32.mrf.mxu0 }
 0x2bb   : > { %2300 = vst.msk [vmem:[%s4261_s30 + $0x140] sm:$0xff] %vm2259_vm3, %v2141_v43  ;;  %v2156_v46 = vadd.f32 %v3491_v45, %v4258_v26 }
 0x2bc   : > { %v2150_v22 = vpop.f32.mrf.mxu0 }
 0x2bd   : > { %2303 = vst.msk [vmem:[%s4261_s30 + $0x158] sm:$0xff] %vm2259_vm3, %v2156_v46  ;;  %v2151_v47 = vadd.f32 %v4258_v26, %v2150_v22 }
 0x2be   : > { %v3494_v48 = vpop.f32.mrf.mxu0 }
 0x2bf   : > { %2302 = vst.msk [vmem:[%s4261_s30 + $0x150] sm:$0xff] %vm2259_vm3, %v2151_v47  ;;  %v2166_v50 = vadd.f32 %v3494_v48, %v4258_v26 }
 0x2c0   : > { %v2160_v51 = vpop.f32.mrf.mxu0 }
 0x2c1   : > { %2305 = vst.msk [vmem:[%s4261_s30 + $0x168] sm:$0xff] %vm2259_vm3, %v2166_v50  ;;  %v2161_v40 = vadd.f32 %v4258_v26, %v2160_v51 }
 0x2c2   : > { %v3497_v53 = vpop.f32.mrf.mxu0 }
 0x2c3   : > { %2304 = vst.msk [vmem:[%s4261_s30 + $0x160] sm:$0xff] %vm2259_vm3, %v2161_v40  ;;  %v2176_v54 = vadd.f32 %v3497_v53, %v4258_v26 }
 0x2c4   : > { %v2170_v55 = vpop.f32.mrf.mxu0 }
 0x2c5   : > { %2307 = vst.msk [vmem:[%s4261_s30 + $0x178] sm:$0xff] %vm2259_vm3, %v2176_v54  ;;  %v2171_v56 = vadd.f32 %v4258_v26, %v2170_v55 }
 0x2c6   : > { %v3500_v58 = vpop.f32.mrf.mxu0 }
 0x2c7   : > { %2306 = vst.msk [vmem:[%s4261_s30 + $0x170] sm:$0xff] %vm2259_vm3, %v2171_v56  ;;  %v2186_v59 = vadd.f32 %v3500_v58, %v4258_v26 }
 0x2c8   : > { %v2180_v60 = vpop.f32.mrf.mxu0 }
 0x2c9   : > { %2309 = vst.msk [vmem:[%s4261_s30 + $0x188] sm:$0xff] %vm2259_vm3, %v2186_v59  ;;  %v2181_v61 = vadd.f32 %v4258_v26, %v2180_v60 }
 0x2ca   : > { %v3503_v62 = vpop.f32.mrf.mxu0 }
 0x2cb   : > { %2308 = vst.msk [vmem:[%s4261_s30 + $0x180] sm:$0xff] %vm2259_vm3, %v2181_v61  ;;  %v2196_v63 = vadd.f32 %v3503_v62, %v4258_v26 }
 0x2cc   : > { %v2190_v1 = vpop.f32.mrf.mxu0 }
 0x2cd   : > { %2311 = vst.msk [vmem:[%s4261_s30 + $0x198] sm:$0xff] %vm2259_vm3, %v2196_v63  ;;  %v2191_v2 = vadd.f32 %v4258_v26, %v2190_v1 }
 0x2ce   : > { %v3506_v3 = vpop.f32.mrf.mxu0 }
 0x2cf   : > { %2310 = vst.msk [vmem:[%s4261_s30 + $0x190] sm:$0xff] %vm2259_vm3, %v2191_v2  ;;  %v2206_v4 = vadd.f32 %v3506_v3, %v4258_v26 }
 0x2d0   : > { %v2200_v6 = vpop.f32.mrf.mxu0 }
 0x2d1   : > { %2313 = vst.msk [vmem:[%s4261_s30 + $0x1a8] sm:$0xff] %vm2259_vm3, %v2206_v4  ;;  %v2201_v7 = vadd.f32 %v4258_v26, %v2200_v6 }
 0x2d2   : > { %v3509_v9 = vpop.f32.mrf.mxu0 }
 0x2d3   : > { %2312 = vst.msk [vmem:[%s4261_s30 + $0x1a0] sm:$0xff] %vm2259_vm3, %v2201_v7  ;;  %v2216_v10 = vadd.f32 %v3509_v9, %v4258_v26 }
 0x2d4   : > { %v2210_v11 = vpop.f32.mrf.mxu0 }
 0x2d5   : > { %2315 = vst.msk [vmem:[%s4261_s30 + $0x1b8] sm:$0xff] %vm2259_vm3, %v2216_v10  ;;  %v2211_v28 = vadd.f32 %v4258_v26, %v2210_v11 }
 0x2d6   : > { %v3512_v12 = vpop.f32.mrf.mxu0 }
 0x2d7   : > { %2314 = vst.msk [vmem:[%s4261_s30 + $0x1b0] sm:$0xff] %vm2259_vm3, %v2211_v28  ;;  %v2226_v13 = vadd.f32 %v3512_v12, %v4258_v26 }
 0x2d8   : > { %v2220_v14 = vpop.f32.mrf.mxu0 }
 0x2d9   : > { %2317 = vst.msk [vmem:[%s4261_s30 + $0x1c8] sm:$0xff] %vm2259_vm3, %v2226_v13  ;;  %v2221_v16 = vadd.f32 %v4258_v26, %v2220_v14 }
 0x2da   : > { %v3515_v36 = vpop.f32.mrf.mxu0 }
 0x2db   : > { %2316 = vst.msk [vmem:[%s4261_s30 + $0x1c0] sm:$0xff] %vm2259_vm3, %v2221_v16  ;;  %v2236_v17 = vadd.f32 %v3515_v36, %v4258_v26 }
 0x2dc   : > { %v2230_v25 = vpop.f32.mrf.mxu0 }
 0x2dd   : > { %2319 = vst.msk [vmem:[%s4261_s30 + $0x1d8] sm:$0xff] %vm2259_vm3, %v2236_v17  ;;  %v2231_v18 = vadd.f32 %v4258_v26, %v2230_v25 }
 0x2de   : > { %v3518_v19 = vpop.f32.mrf.mxu0 }
 0x2df   : > { %2318 = vst.msk [vmem:[%s4261_s30 + $0x1d0] sm:$0xff] %vm2259_vm3, %v2231_v18  ;;  %v2246_v20 = vadd.f32 %v3518_v19, %v4258_v26 }
 0x2e0   : > { %v2240_v21 = vpop.f32.mrf.mxu0 }
 0x2e1   : > { %2321 = vst.msk [vmem:[%s4261_s30 + $0x1e8] sm:$0xff] %vm2259_vm3, %v2246_v20  ;;  %v2241_v33 = vadd.f32 %v4258_v26, %v2240_v21 }
 0x2e2   : > { %v3521_v23 = vpop.f32.mrf.mxu0 }
 0x2e3   : > { %2320 = vst.msk [vmem:[%s4261_s30 + $0x1e0] sm:$0xff] %vm2259_vm3, %v2241_v33  ;;  %v2256_v24 = vadd.f32 %v3521_v23, %v4258_v26  ;;  %2330 = sbr.rel (!%p3765_p4) target bundleno = 808 (0x328), region = 52 }
 0x2e4   : > { %v2250_v52 = vpop.f32.mrf.mxu0 }
 0x2e5   : > { %2323 = vst.msk [vmem:[%s4261_s30 + $0x1f8] sm:$0xff] %vm2259_vm3, %v2256_v24  ;;  %v2251_v44 = vadd.f32 %v4258_v26, %v2250_v52 }
 0x2e7   : > { %2322 = vst.msk [vmem:[%s4261_s30 + $0x1f0] sm:$0xff] %vm2259_vm3, %v2251_v44 }
 0x2e8   : > { %s4678_s24 = smov (!%p2333_p8, %s2332_s24), 64 }
 0x2e9   : > { %s2997_s15 = sshll.u32 %s4678_s24, 7 }
 0x2ea   : > { %p3000_p9 = scmp.eq.s32.totalorder %s2997_s15, 0 }
 0x2eb   : > { %s4467_s16 = sshrl.u32 (!%p3000_p9), %s4678_s24, 6 }
 0x2ec   : > { %2341 = sbr.rel (%p3000_p9) target bundleno = 808 (0x328), region = 56  ;;  %p3001_p10 = scmp.le.s32.totalorder (!%p3000_p9), %s4467_s16, 0 }
 0x2f1   : > { %2748 = sbr.rel (%p3001_p10) target bundleno = 791 (0x317), region = 132  ;;  %s4669_s27 = smov (!%p3001_p10), %s4461_s14 }
 0x2f2   : > { %s4670_s9 = smov (!%p3001_p10), %s4261_s30  ;;  %s4476_s12 = smov (!%p3001_p10), 0  }
 0x2f3   : > { %s4478_s17 = smov (!%p3001_p10), 0  }
 0x2f6 LB: >> { %v2530_v26 = vld [vmem:[%s3674_s9] sm:$0xff]  ;;  %v2532_v5 = vld [vmem:[%s3674_s9 + $0x8] sm:$0xff]  ;;  %v2534_v41 = vld [vmem:[%s3674_s9 + $0x10] sm:$0xff]  ;;  %s2658_s18 = sadd.s32 1, %s3678_s12  ;;  %s2524_s17 = sadd.s32 1, %s3682_s17   ;;  %s3682_s17 = sphi %s4478_s17, %s2524_s17   ;;  %s3678_s12 = sphi %s4476_s12, %s4673_s12   ;;  %s3674_s9 = sphi %s4670_s9, %s4672_s9   ;;  %s3670_s27 = sphi %s4669_s27, %s4671_s27  }
 0x2f7   : >> { %2531 = vst [vmem:[%s3670_s27] sm:$0xff] %v2530_v26  ;;  %2533 = vst [vmem:[%s3670_s27 + $0x8] sm:$0xff] %v2532_v5  ;;  %v2536_v27 = vld [vmem:[%s3674_s9 + $0x18] sm:$0xff]  ;;  %v2538_v29 = vld [vmem:[%s3674_s9 + $0x20] sm:$0xff]  ;;  %p2659_p11 = scmp.ge.s32.totalorder %s2658_s18, %s4467_s16  ;;  %p2523_p12 = scmp.ge.s32.totalorder %s2524_s17, %s4467_s16 }
 0x2f8   : >> { %2535 = vst [vmem:[%s3670_s27 + $0x10] sm:$0xff] %v2534_v41  ;;  %v2540_v30 = vld [vmem:[%s3674_s9 + $0x28] sm:$0xff]  ;;  %2537 = vst [vmem:[%s3670_s27 + $0x18] sm:$0xff] %v2536_v27  ;;  %v2542_v0 = vld [vmem:[%s3674_s9 + $0x30] sm:$0xff] }
 0x2f9   : >> { %2539 = vst [vmem:[%s3670_s27 + $0x20] sm:$0xff] %v2538_v29  ;;  %2541 = vst [vmem:[%s3670_s27 + $0x28] sm:$0xff] %v2540_v30  ;;  %v2544_v49 = vld [vmem:[%s3674_s9 + $0x38] sm:$0xff]  ;;  %v2546_v32 = vld [vmem:[%s3674_s9 + $0x40] sm:$0xff]  ;;  %s4680_s18 = smov (%p2659_p11, %s2658_s18), 0 }
 0x2fa   : >> { %2543 = vst [vmem:[%s3670_s27 + $0x30] sm:$0xff] %v2542_v0  ;;  %2545 = vst [vmem:[%s3670_s27 + $0x38] sm:$0xff] %v2544_v49  ;;  %v2548_v34 = vld [vmem:[%s3674_s9 + $0x48] sm:$0xff]  ;;  %v2550_v35 = vld [vmem:[%s3674_s9 + $0x50] sm:$0xff]  ;;  %s3002_s19 = sshll.u32 %s4680_s18, 9  ;;  %s4673_s12 = smov %s4680_s18 }
 0x2fb   : >> { %2547 = vst [vmem:[%s3670_s27 + $0x40] sm:$0xff] %v2546_v32  ;;  %v2552_v15 = vld [vmem:[%s3674_s9 + $0x58] sm:$0xff]  ;;  %2549 = vst [vmem:[%s3670_s27 + $0x48] sm:$0xff] %v2548_v34  ;;  %v2554_v57 = vld [vmem:[%s3674_s9 + $0x60] sm:$0xff]  ;;  %s4534_s20 = scalar_lea.vmem %s4261_s30, %s3002_s19 [#allocation2]   ;;  %s4537_s21 = scalar_lea.vmem %s4461_s14, %s3002_s19  }
 0x2fc   : >> { %2551 = vst [vmem:[%s3670_s27 + $0x50] sm:$0xff] %v2550_v35  ;;  %2553 = vst [vmem:[%s3670_s27 + $0x58] sm:$0xff] %v2552_v15  ;;  %v2556_v37 = vld [vmem:[%s3674_s9 + $0x68] sm:$0xff]  ;;  %v2558_v38 = vld [vmem:[%s3674_s9 + $0x70] sm:$0xff] }
 0x2fd   : >> { %2555 = vst [vmem:[%s3670_s27 + $0x60] sm:$0xff] %v2554_v57  ;;  %2557 = vst [vmem:[%s3670_s27 + $0x68] sm:$0xff] %v2556_v37  ;;  %v2560_v39 = vld [vmem:[%s3674_s9 + $0x78] sm:$0xff]  ;;  %v2562_v31 = vld [vmem:[%s3674_s9 + $0x80] sm:$0xff] }
 0x2fe   : >> { %2559 = vst [vmem:[%s3670_s27 + $0x70] sm:$0xff] %v2558_v38  ;;  %v2564_v8 = vld [vmem:[%s3674_s9 + $0x88] sm:$0xff]  ;;  %2561 = vst [vmem:[%s3670_s27 + $0x78] sm:$0xff] %v2560_v39  ;;  %v2566_v42 = vld [vmem:[%s3674_s9 + $0x90] sm:$0xff] }
 0x2ff   : >> { %2563 = vst [vmem:[%s3670_s27 + $0x80] sm:$0xff] %v2562_v31  ;;  %2565 = vst [vmem:[%s3670_s27 + $0x88] sm:$0xff] %v2564_v8  ;;  %v2568_v43 = vld [vmem:[%s3674_s9 + $0x98] sm:$0xff]  ;;  %v2570_v45 = vld [vmem:[%s3674_s9 + $0xa0] sm:$0xff] }
 0x300   : >> { %2567 = vst [vmem:[%s3670_s27 + $0x90] sm:$0xff] %v2566_v42  ;;  %2569 = vst [vmem:[%s3670_s27 + $0x98] sm:$0xff] %v2568_v43  ;;  %v2572_v46 = vld [vmem:[%s3674_s9 + $0xa8] sm:$0xff]  ;;  %v2574_v22 = vld [vmem:[%s3674_s9 + $0xb0] sm:$0xff] }
 0x301   : >> { %2571 = vst [vmem:[%s3670_s27 + $0xa0] sm:$0xff] %v2570_v45  ;;  %v2576_v47 = vld [vmem:[%s3674_s9 + $0xb8] sm:$0xff]  ;;  %2573 = vst [vmem:[%s3670_s27 + $0xa8] sm:$0xff] %v2572_v46  ;;  %v2578_v48 = vld [vmem:[%s3674_s9 + $0xc0] sm:$0xff] }
 0x302   : >> { %2575 = vst [vmem:[%s3670_s27 + $0xb0] sm:$0xff] %v2574_v22  ;;  %2577 = vst [vmem:[%s3670_s27 + $0xb8] sm:$0xff] %v2576_v47  ;;  %v2580_v50 = vld [vmem:[%s3674_s9 + $0xc8] sm:$0xff]  ;;  %v2582_v51 = vld [vmem:[%s3674_s9 + $0xd0] sm:$0xff] }
 0x303   : >> { %2579 = vst [vmem:[%s3670_s27 + $0xc0] sm:$0xff] %v2578_v48  ;;  %2581 = vst [vmem:[%s3670_s27 + $0xc8] sm:$0xff] %v2580_v50  ;;  %v2584_v40 = vld [vmem:[%s3674_s9 + $0xd8] sm:$0xff]  ;;  %v2586_v53 = vld [vmem:[%s3674_s9 + $0xe0] sm:$0xff] }
 0x304   : >> { %2583 = vst [vmem:[%s3670_s27 + $0xd0] sm:$0xff] %v2582_v51  ;;  %v2588_v54 = vld [vmem:[%s3674_s9 + $0xe8] sm:$0xff]  ;;  %2585 = vst [vmem:[%s3670_s27 + $0xd8] sm:$0xff] %v2584_v40  ;;  %v2590_v55 = vld [vmem:[%s3674_s9 + $0xf0] sm:$0xff] }
 0x305   : >> { %2587 = vst [vmem:[%s3670_s27 + $0xe0] sm:$0xff] %v2586_v53  ;;  %2589 = vst [vmem:[%s3670_s27 + $0xe8] sm:$0xff] %v2588_v54  ;;  %v2592_v56 = vld [vmem:[%s3674_s9 + $0xf8] sm:$0xff]  ;;  %v2594_v58 = vld [vmem:[%s3674_s9 + $0x100] sm:$0xff] }
 0x306   : >> { %2591 = vst [vmem:[%s3670_s27 + $0xf0] sm:$0xff] %v2590_v55  ;;  %2593 = vst [vmem:[%s3670_s27 + $0xf8] sm:$0xff] %v2592_v56  ;;  %v2596_v59 = vld [vmem:[%s3674_s9 + $0x108] sm:$0xff]  ;;  %v2598_v60 = vld [vmem:[%s3674_s9 + $0x110] sm:$0xff] }
 0x307   : >> { %2595 = vst [vmem:[%s3670_s27 + $0x100] sm:$0xff] %v2594_v58  ;;  %v2600_v61 = vld [vmem:[%s3674_s9 + $0x118] sm:$0xff]  ;;  %2597 = vst [vmem:[%s3670_s27 + $0x108] sm:$0xff] %v2596_v59  ;;  %v2602_v62 = vld [vmem:[%s3674_s9 + $0x120] sm:$0xff] }
 0x308   : >> { %2599 = vst [vmem:[%s3670_s27 + $0x110] sm:$0xff] %v2598_v60  ;;  %2601 = vst [vmem:[%s3670_s27 + $0x118] sm:$0xff] %v2600_v61  ;;  %v2604_v63 = vld [vmem:[%s3674_s9 + $0x128] sm:$0xff]  ;;  %v2606_v1 = vld [vmem:[%s3674_s9 + $0x130] sm:$0xff] }
 0x309   : >> { %2603 = vst [vmem:[%s3670_s27 + $0x120] sm:$0xff] %v2602_v62  ;;  %2605 = vst [vmem:[%s3670_s27 + $0x128] sm:$0xff] %v2604_v63  ;;  %v2608_v2 = vld [vmem:[%s3674_s9 + $0x138] sm:$0xff]  ;;  %v2610_v3 = vld [vmem:[%s3674_s9 + $0x140] sm:$0xff] }
 0x30a   : >> { %2607 = vst [vmem:[%s3670_s27 + $0x130] sm:$0xff] %v2606_v1  ;;  %v2612_v4 = vld [vmem:[%s3674_s9 + $0x148] sm:$0xff]  ;;  %2609 = vst [vmem:[%s3670_s27 + $0x138] sm:$0xff] %v2608_v2  ;;  %v2614_v6 = vld [vmem:[%s3674_s9 + $0x150] sm:$0xff] }
 0x30b   : >> { %2611 = vst [vmem:[%s3670_s27 + $0x140] sm:$0xff] %v2610_v3  ;;  %2613 = vst [vmem:[%s3670_s27 + $0x148] sm:$0xff] %v2612_v4  ;;  %v2616_v7 = vld [vmem:[%s3674_s9 + $0x158] sm:$0xff]  ;;  %v2618_v9 = vld [vmem:[%s3674_s9 + $0x160] sm:$0xff] }
 0x30c   : >> { %2615 = vst [vmem:[%s3670_s27 + $0x150] sm:$0xff] %v2614_v6  ;;  %2617 = vst [vmem:[%s3670_s27 + $0x158] sm:$0xff] %v2616_v7  ;;  %v2620_v10 = vld [vmem:[%s3674_s9 + $0x168] sm:$0xff]  ;;  %v2622_v11 = vld [vmem:[%s3674_s9 + $0x170] sm:$0xff] }
 0x30d   : >> { %2619 = vst [vmem:[%s3670_s27 + $0x160] sm:$0xff] %v2618_v9  ;;  %v2624_v28 = vld [vmem:[%s3674_s9 + $0x178] sm:$0xff]  ;;  %2621 = vst [vmem:[%s3670_s27 + $0x168] sm:$0xff] %v2620_v10  ;;  %v2626_v12 = vld [vmem:[%s3674_s9 + $0x180] sm:$0xff] }
 0x30e   : >> { %2623 = vst [vmem:[%s3670_s27 + $0x170] sm:$0xff] %v2622_v11  ;;  %2625 = vst [vmem:[%s3670_s27 + $0x178] sm:$0xff] %v2624_v28  ;;  %v2628_v13 = vld [vmem:[%s3674_s9 + $0x188] sm:$0xff]  ;;  %v2630_v14 = vld [vmem:[%s3674_s9 + $0x190] sm:$0xff] }
 0x30f   : >> { %2627 = vst [vmem:[%s3670_s27 + $0x180] sm:$0xff] %v2626_v12  ;;  %2629 = vst [vmem:[%s3670_s27 + $0x188] sm:$0xff] %v2628_v13  ;;  %v2632_v16 = vld [vmem:[%s3674_s9 + $0x198] sm:$0xff]  ;;  %v2634_v36 = vld [vmem:[%s3674_s9 + $0x1a0] sm:$0xff] }
 0x310   : >> { %2631 = vst [vmem:[%s3670_s27 + $0x190] sm:$0xff] %v2630_v14  ;;  %v2636_v17 = vld [vmem:[%s3674_s9 + $0x1a8] sm:$0xff]  ;;  %2633 = vst [vmem:[%s3670_s27 + $0x198] sm:$0xff] %v2632_v16  ;;  %v2638_v25 = vld [vmem:[%s3674_s9 + $0x1b0] sm:$0xff] }
 0x311   : >> { %2635 = vst [vmem:[%s3670_s27 + $0x1a0] sm:$0xff] %v2634_v36  ;;  %2637 = vst [vmem:[%s3670_s27 + $0x1a8] sm:$0xff] %v2636_v17  ;;  %v2640_v18 = vld [vmem:[%s3674_s9 + $0x1b8] sm:$0xff]  ;;  %v2642_v19 = vld [vmem:[%s3674_s9 + $0x1c0] sm:$0xff] }
 0x312   : >> { %2639 = vst [vmem:[%s3670_s27 + $0x1b0] sm:$0xff] %v2638_v25  ;;  %2641 = vst [vmem:[%s3670_s27 + $0x1b8] sm:$0xff] %v2640_v18  ;;  %v2644_v20 = vld [vmem:[%s3674_s9 + $0x1c8] sm:$0xff]  ;;  %v2646_v21 = vld [vmem:[%s3674_s9 + $0x1d0] sm:$0xff]  ;;  %2526 = sbr.rel (!%p2523_p12) target bundleno = 758 (0x2f6), region = 138 }
 0x313   : >> { %2643 = vst [vmem:[%s3670_s27 + $0x1c0] sm:$0xff] %v2642_v19  ;;  %v2648_v33 = vld [vmem:[%s3674_s9 + $0x1d8] sm:$0xff]  ;;  %2645 = vst [vmem:[%s3670_s27 + $0x1c8] sm:$0xff] %v2644_v20  ;;  %v2650_v23 = vld [vmem:[%s3674_s9 + $0x1e0] sm:$0xff] }
 0x314   : >> { %2647 = vst [vmem:[%s3670_s27 + $0x1d0] sm:$0xff] %v2646_v21  ;;  %2649 = vst [vmem:[%s3670_s27 + $0x1d8] sm:$0xff] %v2648_v33  ;;  %v2652_v24 = vld [vmem:[%s3674_s9 + $0x1e8] sm:$0xff]  ;;  %v2654_v52 = vld [vmem:[%s3674_s9 + $0x1f0] sm:$0xff] }
 0x315   : >> { %2651 = vst [vmem:[%s3670_s27 + $0x1e0] sm:$0xff] %v2650_v23  ;;  %2653 = vst [vmem:[%s3670_s27 + $0x1e8] sm:$0xff] %v2652_v24  ;;  %v2656_v44 = vld [vmem:[%s3674_s9 + $0x1f8] sm:$0xff]  ;;  %s4672_s9 = smov %s4534_s20 }
 0x316   : >> { %2655 = vst [vmem:[%s3670_s27 + $0x1f0] sm:$0xff] %v2654_v52  ;;  %2657 = vst [vmem:[%s3670_s27 + $0x1f8] sm:$0xff] %v2656_v44  ;;  %s4671_s27 = smov %s4537_s21 }
 0x317 PF: > { %s4642_s22 = sand.u32 63, %s4678_s24   ;;  %s3013_s23 = sshll.u32 %s4467_s16, 9 }
 0x318   : > { %s2669_s26 = scalar_lea.vmem %s4261_s30, %s3013_s23 [#allocation2]   ;;  %s2671_s29 = scalar_lea.vmem %s4461_s14, %s3013_s23  }
 0x319   : > { %p3007_p13 = scmp.le.s32.totalorder %s4642_s22, 0 }
 0x31a   : > { %s3684_s10 = smov (!%p3007_p13), %s2671_s29   ;;  %s3688_s11 = smov (!%p3007_p13), %s2669_s26  }
 0x31b   : > { %2762 = sbr.rel (%p3007_p13) target bundleno = 808 (0x328), region = 143  ;;  %s3692_s13 = smov (!%p3007_p13), 0  }
 0x31c   : > { %s3696_s15 = smov (!%p3007_p13), 0  }
 0x320 LB: >> { %v2681_v26 = vld [vmem:[%s3690_s11] sm:$0xff]  ;;  %s2683_s24 = sadd.s32 1, %s3694_s13  ;;  %s2675_s15 = sadd.s32 1, %s3698_s15   ;;  %s3698_s15 = sphi %s3696_s15, %s2675_s15   ;;  %s3694_s13 = sphi %s3692_s13, %s3693_s13   ;;  %s3690_s11 = sphi %s3688_s11, %s2688_s11   ;;  %s3686_s10 = sphi %s3684_s10, %s2689_s10  }
 0x321   : >> { %2682 = vst [vmem:[%s3686_s10] sm:$0xff] %v2681_v26  ;;  %p2684_p0 = scmp.ge.s32.totalorder %s2683_s24, %s4642_s22  ;;  %p2674_p1 = scmp.ge.s32.totalorder %s2675_s15, %s4642_s22 }
 0x323   : >> { %s4682_s24 = smov (%p2684_p0, %s2683_s24), 0  ;;  %2677 = sbr.rel (!%p2674_p1) target bundleno = 800 (0x320), region = 149 }
 0x324   : >> { %s3008_s30 = sshll.u32 %s4682_s24, 3  ;;  %s3693_s13 = smov %s4682_s24  }
 0x325   : >> { %s2688_s11 = scalar_lea.vmem %s2669_s26, %s3008_s30 [#allocation2]   ;;  %s2689_s10 = scalar_lea.vmem %s2671_s29, %s3008_s30  }
 0x328 PF: > { %p14_p2 = scmp.ge.s32.totalorder %s3755_s28, 6   ;;  %s4674_s24 = smov %s3662_s25 }
 0x329   : > { %s4675_s25 = smov %s3763_s8  ;;  %s4676_s26 = smov %s3755_s28 }
 0x32a   :  { %16 = sbr.rel (!%p14_p2) target bundleno = 2 (0x2), region = 160 }

</bundles_post_ra>
